<compile_context>
chip_gen: v6e
topology: v6e:2x2x1
jax: 0.10.0
libtpu: 0.0.40
codegen_flags: <defaults>
</compile_context>

<pallas_src>
import math

import jax
import jax.numpy as jnp
from jax.experimental import pallas as pl
from jax.experimental.pallas import tpu as pltpu

CH = 128          # attention channel width (x_lift = Conv1d(1, 128*3, 1))
NEG_SLOPE = 0.01  # nn.LeakyReLU default


def _leaky_relu(v):
    return jnp.where(v >= 0, v, NEG_SLOPE * v)


def _silu(v):
    # Exact sigmoid; this op count (B*(dim_ctx+D) elements) is negligible next to the
    # (B, D, 2D) softmax exp, so precision is preferred over the approx-reciprocal form.
    return v / (1.0 + jnp.exp(-v))


def concat_squash_attn_kernel(
        consts_ref,                  # SMEM (12,) f32: rank-1 attention scalars
        x_ref, ctx_ref,              # (B, dim_in), (B, dim_ctx)
        w_xs_ref, b_xs_ref,          # (dim_in, 2D), (1, 2D)  fused _layer_in | _skip
        w_ctx_ref, b_ctx_ref,        # (dim_ctx, D), (1, D)
        w_out_ref, b_out_ref,        # (D, D), (1, D)  (xc_sqz bias pre-folded)
        out_ref):                    # (B, D)
    f32 = jnp.float32
    D = out_ref.shape[-1]

    x = x_ref[...].astype(f32)       # (B, dim_in)
    ctx = ctx_ref[...].astype(f32)   # (B, dim_ctx)

    # ---- fused input/skip head + context head -------------------------------------
    xs = jnp.dot(x, w_xs_ref[...], preferred_element_type=f32) + b_xs_ref[...]  # (B, 2D)
    x_l = _leaky_relu(xs[:, :D])                                                 # (B, D)
    skip = xs[:, D:]                                                             # (B, D)
    c_l = jnp.dot(_silu(ctx), w_ctx_ref[...], preferred_element_type=f32) + b_ctx_ref[...]
    c_l = _silu(c_l)                                                             # (B, D)

    # ---- rank-1-collapsed attention logits (no q/k slabs, no MXU einsums) ----------
    a1e = consts_ref[0]; a2e = consts_ref[1]; a3e = consts_ref[2]; a4e = consts_ref[3]
    a1s = consts_ref[4]; a2s = consts_ref[5]; a3s = consts_ref[6]; a4s = consts_ref[7]
    a_ev = consts_ref[8]; c_ev = consts_ref[9]; a_v = consts_ref[10]; c_v = consts_ref[11]

    col_e = a1e * x_l + a2e          # coefficient of c_l[b, s]
    row_e = a3e * x_l + a4e          # additive term per query position t
    col_s = a1s * x_l + a2s
    row_s = a3s * x_l + a4s
    log_e = col_e[:, :, None] * c_l[:, None, :] + row_e[:, :, None]   # (B, D, D) enc keys
    log_s = col_s[:, :, None] * x_l[:, None, :] + row_s[:, :, None]   # (B, D, D) self keys

    # ---- softmax fused with the xc_sqz-pre-contracted value reduction -------------
    m = jnp.maximum(jnp.max(log_e, axis=-1, keepdims=True),
                    jnp.max(log_s, axis=-1, keepdims=True))           # (B, D, 1)
    p_e = jnp.exp(log_e - m)
    p_s = jnp.exp(log_s - m)
    vs_e = a_ev * c_l + c_ev          # (wsq . encoder_values)[b, s]   (B, D)
    vs_s = a_v * x_l + c_v            # (wsq . self_values)[b, s]      (B, D)
    denom = jnp.sum(p_e, axis=-1) + jnp.sum(p_s, axis=-1)              # (B, D)
    numer = (jnp.sum(p_e * vs_e[:, None, :], axis=-1)
             + jnp.sum(p_s * vs_s[:, None, :], axis=-1))               # (B, D)
    sq = numer * pl.reciprocal(denom, approx=True)                     # (B, D)

    # ---- output head + skip --------------------------------------------------------
    ret = jnp.dot(sq, w_out_ref[...], preferred_element_type=f32) + b_out_ref[...]
    out_ref[...] = (ret + skip).astype(out_ref.dtype)


def _vmem_capacity_bytes():
    try:
        cap = getattr(pltpu.get_tpu_info(), "vmem_capacity_bytes", None)
        if cap:
            return int(cap)
    except Exception:
        pass
    return 64 << 20   # conservative (v7x-sized) fallback


def _pick_tile_b(b, dim_out, vmem_cap):
    # Live f32 intermediates per batch row ~ 3-4 (D, D) softmax slabs.
    per_row = 4 * dim_out * dim_out * 4
    budget = int(0.35 * vmem_cap)
    cap = max(8, min(128, budget // max(per_row, 1)))
    cap -= cap % 8
    cap = max(cap, 8)
    if b <= cap:
        # Split cleanly-splittable small batches into two tiles so the "parallel"
        # grid axis can shard across v7x's two TensorCores (free on 1-TC chips).
        if b >= 16 and b % 16 == 0 and (b // 2) <= cap:
            return b // 2
        return b
    # Prefer a multiple-of-8 tile that divides b exactly (avoids wrapper-side pad copy).
    for tb in range(cap, 7, -8):
        if b % tb == 0:
            return tb
    return cap   # fallback: pad the tail tile


def concat_squash_attn_forward(ctx, x, kernel_params, *, tile_b=None):
    (consts, w_xs, b_xs, w_ctx_t, b_ctx, w_out_t, b_out) = kernel_params
    b, dim_in = x.shape
    dim_ctx = ctx.shape[1]
    dim_out = w_out_t.shape[1]

    vmem_cap = _vmem_capacity_bytes()
    if tile_b is None:
        tile_b = _pick_tile_b(b, dim_out, vmem_cap)
    num_tiles = pl.cdiv(b, tile_b)
    bp = num_tiles * tile_b
    if bp != b:
        # Fallback only; _pick_tile_b prefers tiles that divide b exactly.
        x = jnp.pad(x, ((0, bp - b), (0, 0)))
        ctx = jnp.pad(ctx, ((0, bp - b), (0, 0)))

    def batch_map(i):
        return (i, 0)

    def const_map(i):
        return (0, 0)

    weights = (w_xs, b_xs, w_ctx_t, b_ctx, w_out_t, b_out)
    in_specs = [
        pl.BlockSpec(memory_space=pltpu.MemorySpace.SMEM),            # 12 scalars
        pl.BlockSpec((tile_b, dim_in), batch_map),
        pl.BlockSpec((tile_b, dim_ctx), batch_map),
    ] + [pl.BlockSpec(w.shape, const_map) for w in weights]

    # ---- cost estimate (post-rewrite: MXU work is tiny; softmax exp dominates) -----
    matmul_flops = 2.0 * (dim_in * 2 * dim_out + dim_ctx * dim_out + dim_out * dim_out)
    vpu_flops = 16.0 * dim_out * dim_out + 16.0 * dim_out
    cost = pl.CostEstimate(
        flops=int(bp * (matmul_flops + vpu_flops)),
        transcendentals=int(bp * (dim_ctx + 2 * dim_out + 2 * dim_out * dim_out)),
        bytes_accessed=int(4 * (x.size + ctx.size + consts.size
                                + sum(int(w.size) for w in weights) + bp * dim_out)),
    )

    # ---- VMEM budget: softmax slabs + resident weights + double-buffered I/O -------
    weight_bytes = 4 * (int(consts.size) + sum(int(w.size) for w in weights))
    io_bytes = 4 * tile_b * (dim_in + dim_ctx + dim_out)
    inter_bytes = 4 * tile_b * (4 * dim_out * dim_out + 16 * dim_out)
    vmem_limit = int(max(32 << 20,
                         min(int(0.85 * vmem_cap),
                             inter_bytes + weight_bytes + 4 * io_bytes + (8 << 20))))

    out = pl.pallas_call(
        concat_squash_attn_kernel,
        grid=(num_tiles,),
        in_specs=in_specs,
        out_specs=pl.BlockSpec((tile_b, dim_out), batch_map),
        out_shape=jax.ShapeDtypeStruct((bp, dim_out), jnp.float32),
        compiler_params=pltpu.CompilerParams(
            dimension_semantics=("parallel",),
            vmem_limit_bytes=vmem_limit),
        cost_estimate=cost,
    )(consts, x, ctx, *weights)
    return out[:b]


def init_params(key, dim_in, dim_out, dim_ctx):
    """PyTorch-default-style init; returns (kernel layout, raw PyTorch layout)."""
    ks = jax.random.split(key, 7)

    def linear(k, fan_in, fan_out):
        bound = 1.0 / math.sqrt(fan_in)
        kw, kb = jax.random.split(k)
        w = jax.random.uniform(kw, (fan_out, fan_in), jnp.float32, -bound, bound)
        bv = jax.random.uniform(kb, (fan_out,), jnp.float32, -bound, bound)
        return w, bv

    def conv1x1(k, cin, cout):
        bound = 1.0 / math.sqrt(cin)           # kernel_size = 1
        kw, kb = jax.random.split(k)
        w = jax.random.uniform(kw, (cout, cin, 1), jnp.float32, -bound, bound)
        bv = jax.random.uniform(kb, (cout,), jnp.float32, -bound, bound)
        return w, bv

    W_in, b_in = linear(ks[0], dim_in, dim_out)
    W_ctx, b_ctx = linear(ks[1], dim_ctx, dim_out)
    Wxl, bxl = conv1x1(ks[2], 1, 3 * CH)       # x_lift
    Wcl, bcl = conv1x1(ks[3], 1, 2 * CH)       # c_lift
    Wsq, bsq = conv1x1(ks[4], CH, 1)           # xc_sqz
    W_out, b_out = linear(ks[5], dim_out, dim_out)
    W_sk, b_sk = linear(ks[6], dim_in, dim_out)

    raw = (W_in, b_in, W_ctx, b_ctx, Wxl, bxl, Wcl, bcl, Wsq, bsq, W_out, b_out, W_sk, b_sk)

    # ---- kernel layout: rank-1 attention scalars + pre-transposed / fused weights ---
    wx = Wxl.reshape(3 * CH)
    wq, wk, wv = wx[:CH], wx[CH:2 * CH], wx[2 * CH:]
    bq, bk, bv_ = bxl[:CH], bxl[CH:2 * CH], bxl[2 * CH:]
    wc = Wcl.reshape(2 * CH)
    wek, wev = wc[:CH], wc[CH:]
    bek, bev = bcl[:CH], bcl[CH:]
    wsq = Wsq.reshape(CH)

    scale2 = 1.0 / math.sqrt(float(CH))        # (1/CH**0.25)**2, folded into logits
    consts = jnp.stack([
        scale2 * jnp.dot(wq, wek), scale2 * jnp.dot(bq, wek),
        scale2 * jnp.dot(wq, bek), scale2 * jnp.dot(bq, bek),
        scale2 * jnp.dot(wq, wk),  scale2 * jnp.dot(bq, wk),
        scale2 * jnp.dot(wq, bk),  scale2 * jnp.dot(bq, bk),
        jnp.dot(wsq, wev), jnp.dot(wsq, bev),
        jnp.dot(wsq, wv),  jnp.dot(wsq, bv_),
    ]).astype(jnp.float32)                     # (12,) grid-invariant SMEM scalars

    w_xs = jnp.concatenate([W_in.T, W_sk.T], axis=1)                 # (dim_in, 2D)
    b_xs = jnp.concatenate([b_in, b_sk]).reshape(1, 2 * dim_out)     # (1, 2D)
    b_out_eff = b_out + bsq[0] * W_out.sum(axis=1)                   # fold xc_sqz bias

    kernel_params = (
        consts,
        w_xs, b_xs,
        W_ctx.T, b_ctx.reshape(1, dim_out),
        W_out.T, b_out_eff.reshape(1, dim_out),
    )
    return kernel_params, raw


def reference_forward(ctx, x, raw):
    """Pure-JAX replica of the PyTorch forward (for validation)."""
    (W_in, b_in, W_ctx, b_ctx, Wxl, bxl, Wcl, bcl, Wsq, bsq, W_out, b_out, W_sk, b_sk) = raw
    x_l = _leaky_relu(x @ W_in.T + b_in)                           # (b, D)
    c_l = _silu(_silu(ctx) @ W_ctx.T + b_ctx)                      # (b, D)
    qkv = Wxl[:, 0, 0][None, :, None] * x_l[:, None, :] + bxl[None, :, None]   # (b,384,D)
    ekv = Wcl[:, 0, 0][None, :, None] * c_l[:, None, :] + bcl[None, :, None]   # (b,256,D)
    q, k, v = qkv[:, :CH], qkv[:, CH:2 * CH], qkv[:, 2 * CH:]
    ek, ev = ekv[:, :CH], ekv[:, CH:]
    k = jnp.concatenate([ek, k], axis=-1)                          # (b, CH, 2D)
    v = jnp.concatenate([ev, v], axis=-1)
    scale = 1.0 / math.sqrt(math.sqrt(CH))
    w = jnp.einsum('bct,bcs->bts', q * scale, k * scale)
    w = jax.nn.softmax(w, axis=-1)
    a = jnp.einsum('bts,bcs->bct', w, v)                           # (b, CH, D)
    sqz = jnp.einsum('c,bct->bt', Wsq[0, :, 0], a) + bsq[0]        # Conv1d(CH,1,1)+squeeze
    ret = sqz @ W_out.T + b_out
    return ret + x @ W_sk.T + b_sk


if __name__ == "__main__":
    batch, dim_in, dim_ctx, dim_out = 2, 16, 32, 128

    key = jax.random.PRNGKey(0)
    kx, kc, kp = jax.random.split(key, 3)
    x = jax.random.normal(kx, (batch, dim_in), jnp.float32)
    ctx = jax.random.normal(kc, (batch, dim_ctx), jnp.float32)

    kernel_params, raw_params = init_params(kp, dim_in, dim_out, dim_ctx)

    out = concat_squash_attn_forward(ctx, x, kernel_params)
    out = jax.block_until_ready(out)

    ref = reference_forward(ctx, x, raw_params)
    assert out.shape == (batch, dim_out)
    assert bool(jnp.all(jnp.isfinite(out)))
    assert jnp.allclose(out, ref, rtol=2e-3, atol=2e-3), (
        f"max abs err {jnp.max(jnp.abs(out - ref))}")

    print("KERNEL_OK")
</pallas_src>

<mosaic_0001>
module attributes {stable_mosaic.version = 11 : i64} {
  func.func @concat_squash_attn_kernel(%arg0: i32, %arg1: memref<12xf32, #tpu.memory_space<smem>>, %arg2: memref<2x16xf32, #tpu.memory_space<vmem>>, %arg3: memref<2x32xf32, #tpu.memory_space<vmem>>, %arg4: memref<16x256xf32, #tpu.memory_space<vmem>>, %arg5: memref<1x256xf32, #tpu.memory_space<vmem>>, %arg6: memref<32x128xf32, #tpu.memory_space<vmem>>, %arg7: memref<1x128xf32, #tpu.memory_space<vmem>>, %arg8: memref<128x128xf32, #tpu.memory_space<vmem>>, %arg9: memref<1x128xf32, #tpu.memory_space<vmem>>, %arg10: memref<2x128xf32, #tpu.memory_space<vmem>>) attributes {dimension_semantics = [#tpu.dimension_semantics<parallel>], iteration_bounds = array<i64: 1>, scalar_prefetch = 0 : i64, scratch_operands = 0 : i64, tpu.core_type = #tpu.core_type<tc>, window_params = [{transform_indices = @transform_0, window_bounds = array<i64: 12>}, {transform_indices = @transform_1, window_bounds = array<i64: 2, 16>}, {transform_indices = @transform_2, window_bounds = array<i64: 2, 32>}, {pipeline_mode = #tpu.pipeline_mode<synchronous>, transform_indices = @transform_3, window_bounds = array<i64: 16, 256>}, {pipeline_mode = #tpu.pipeline_mode<synchronous>, transform_indices = @transform_4, window_bounds = array<i64: 1, 256>}, {pipeline_mode = #tpu.pipeline_mode<synchronous>, transform_indices = @transform_5, window_bounds = array<i64: 32, 128>}, {pipeline_mode = #tpu.pipeline_mode<synchronous>, transform_indices = @transform_6, window_bounds = array<i64: 1, 128>}, {pipeline_mode = #tpu.pipeline_mode<synchronous>, transform_indices = @transform_7, window_bounds = array<i64: 128, 128>}, {pipeline_mode = #tpu.pipeline_mode<synchronous>, transform_indices = @transform_8, window_bounds = array<i64: 1, 128>}, {transform_indices = @transform_9, window_bounds = array<i64: 2, 128>}]} {
    %c0 = arith.constant 0 : index
    %c0_0 = arith.constant 0 : index
    %0 = vector.load %arg2[%c0, %c0_0] : memref<2x16xf32, #tpu.memory_space<vmem>>, vector<2x16xf32>
    %c0_1 = arith.constant 0 : index
    %c0_2 = arith.constant 0 : index
    %1 = vector.load %arg3[%c0_1, %c0_2] : memref<2x32xf32, #tpu.memory_space<vmem>>, vector<2x32xf32>
    %c0_3 = arith.constant 0 : index
    %c0_4 = arith.constant 0 : index
    %2 = vector.load %arg4[%c0_3, %c0_4] : memref<16x256xf32, #tpu.memory_space<vmem>>, vector<16x256xf32>
    %cst = arith.constant dense<0.000000e+00> : vector<2x256xf32>
    %3 = tpu.matmul %0, %2, %cst {dimension_numbers = #tpu.dot_dimension_numbers<[1], [0], [0], [1], [0, 0, 1, 1], [], []>} : vector<2x16xf32>, vector<16x256xf32>, vector<2x256xf32> -> vector<2x256xf32>
    %c0_5 = arith.constant 0 : index
    %c0_6 = arith.constant 0 : index
    %4 = vector.load %arg5[%c0_5, %c0_6] : memref<1x256xf32, #tpu.memory_space<vmem>>, vector<1x256xf32>
    %5 = vector.broadcast %4 : vector<1x256xf32> to vector<2x256xf32>
    %6 = arith.addf %3, %5 : vector<2x256xf32>
    %7 = vector.extract_strided_slice %6 {offsets = [0, 0], sizes = [2, 128], strides = [1, 1]} : vector<2x256xf32> to vector<2x128xf32>
    %cst_7 = arith.constant 0.000000e+00 : f32
    %8 = vector.broadcast %cst_7 : f32 to vector<2x128xf32>
    %9 = arith.cmpf oge, %7, %8 : vector<2x128xf32>
    %cst_8 = arith.constant 0.00999999977 : f32
    %10 = vector.broadcast %cst_8 : f32 to vector<2x128xf32>
    %11 = arith.mulf %10, %7 : vector<2x128xf32>
    %12 = arith.select %9, %7, %11 : vector<2x128xi1>, vector<2x128xf32>
    %13 = vector.extract_strided_slice %6 {offsets = [0, 128], sizes = [2, 128], strides = [1, 1]} : vector<2x256xf32> to vector<2x128xf32>
    %cst_9 = arith.constant 0.000000e+00 : f32
    %14 = vector.broadcast %cst_9 : f32 to vector<2x32xf32>
    %15 = arith.subf %14, %1 : vector<2x32xf32>
    %16 = math.exp %15 : vector<2x32xf32>
    %cst_10 = arith.constant 1.000000e+00 : f32
    %17 = vector.broadcast %cst_10 : f32 to vector<2x32xf32>
    %18 = arith.addf %17, %16 : vector<2x32xf32>
    %19 = arith.divf %1, %18 : vector<2x32xf32>
    %c0_11 = arith.constant 0 : index
    %c0_12 = arith.constant 0 : index
    %20 = vector.load %arg6[%c0_11, %c0_12] : memref<32x128xf32, #tpu.memory_space<vmem>>, vector<32x128xf32>
    %cst_13 = arith.constant dense<0.000000e+00> : vector<2x128xf32>
    %21 = tpu.matmul %19, %20, %cst_13 {dimension_numbers = #tpu.dot_dimension_numbers<[1], [0], [0], [1], [0, 0, 1, 1], [], []>} : vector<2x32xf32>, vector<32x128xf32>, vector<2x128xf32> -> vector<2x128xf32>
    %c0_14 = arith.constant 0 : index
    %c0_15 = arith.constant 0 : index
    %22 = vector.load %arg7[%c0_14, %c0_15] : memref<1x128xf32, #tpu.memory_space<vmem>>, vector<1x128xf32>
    %23 = vector.broadcast %22 : vector<1x128xf32> to vector<2x128xf32>
    %24 = arith.addf %21, %23 : vector<2x128xf32>
    %cst_16 = arith.constant 0.000000e+00 : f32
    %25 = vector.broadcast %cst_16 : f32 to vector<2x128xf32>
    %26 = arith.subf %25, %24 : vector<2x128xf32>
    %27 = math.exp %26 : vector<2x128xf32>
    %cst_17 = arith.constant 1.000000e+00 : f32
    %28 = vector.broadcast %cst_17 : f32 to vector<2x128xf32>
    %29 = arith.addf %28, %27 : vector<2x128xf32>
    %30 = arith.divf %24, %29 : vector<2x128xf32>
    %c0_18 = arith.constant 0 : index
    %31 = memref.load %arg1[%c0_18] : memref<12xf32, #tpu.memory_space<smem>>
    %c1 = arith.constant 1 : index
    %32 = memref.load %arg1[%c1] : memref<12xf32, #tpu.memory_space<smem>>
    %c2 = arith.constant 2 : index
    %33 = memref.load %arg1[%c2] : memref<12xf32, #tpu.memory_space<smem>>
    %c3 = arith.constant 3 : index
    %34 = memref.load %arg1[%c3] : memref<12xf32, #tpu.memory_space<smem>>
    %c4 = arith.constant 4 : index
    %35 = memref.load %arg1[%c4] : memref<12xf32, #tpu.memory_space<smem>>
    %c5 = arith.constant 5 : index
    %36 = memref.load %arg1[%c5] : memref<12xf32, #tpu.memory_space<smem>>
    %c6 = arith.constant 6 : index
    %37 = memref.load %arg1[%c6] : memref<12xf32, #tpu.memory_space<smem>>
    %c7 = arith.constant 7 : index
    %38 = memref.load %arg1[%c7] : memref<12xf32, #tpu.memory_space<smem>>
    %c8 = arith.constant 8 : index
    %39 = memref.load %arg1[%c8] : memref<12xf32, #tpu.memory_space<smem>>
    %c9 = arith.constant 9 : index
    %40 = memref.load %arg1[%c9] : memref<12xf32, #tpu.memory_space<smem>>
    %c10 = arith.constant 10 : index
    %41 = memref.load %arg1[%c10] : memref<12xf32, #tpu.memory_space<smem>>
    %c11 = arith.constant 11 : index
    %42 = memref.load %arg1[%c11] : memref<12xf32, #tpu.memory_space<smem>>
    %43 = vector.broadcast %31 : f32 to vector<2x128xf32>
    %44 = arith.mulf %43, %12 : vector<2x128xf32>
    %45 = vector.broadcast %32 : f32 to vector<2x128xf32>
    %46 = arith.addf %44, %45 : vector<2x128xf32>
    %47 = vector.broadcast %33 : f32 to vector<2x128xf32>
    %48 = arith.mulf %47, %12 : vector<2x128xf32>
    %49 = vector.broadcast %34 : f32 to vector<2x128xf32>
    %50 = arith.addf %48, %49 : vector<2x128xf32>
    %51 = vector.broadcast %35 : f32 to vector<2x128xf32>
    %52 = arith.mulf %51, %12 : vector<2x128xf32>
    %53 = vector.broadcast %36 : f32 to vector<2x128xf32>
    %54 = arith.addf %52, %53 : vector<2x128xf32>
    %55 = vector.broadcast %37 : f32 to vector<2x128xf32>
    %56 = arith.mulf %55, %12 : vector<2x128xf32>
    %57 = vector.broadcast %38 : f32 to vector<2x128xf32>
    %58 = arith.addf %56, %57 : vector<2x128xf32>
    %59 = vector.shape_cast %46 : vector<2x128xf32> to vector<2x128x1xf32>
    %60 = vector.shape_cast %30 : vector<2x128xf32> to vector<2x1x128xf32>
    %61 = vector.broadcast %59 : vector<2x128x1xf32> to vector<2x128x128xf32>
    %62 = vector.broadcast %60 : vector<2x1x128xf32> to vector<2x128x128xf32>
    %63 = arith.mulf %61, %62 : vector<2x128x128xf32>
    %64 = vector.shape_cast %50 : vector<2x128xf32> to vector<2x128x1xf32>
    %65 = vector.broadcast %64 : vector<2x128x1xf32> to vector<2x128x128xf32>
    %66 = arith.addf %63, %65 : vector<2x128x128xf32>
    %67 = vector.shape_cast %54 : vector<2x128xf32> to vector<2x128x1xf32>
    %68 = vector.shape_cast %12 : vector<2x128xf32> to vector<2x1x128xf32>
    %69 = vector.broadcast %67 : vector<2x128x1xf32> to vector<2x128x128xf32>
    %70 = vector.broadcast %68 : vector<2x1x128xf32> to vector<2x128x128xf32>
    %71 = arith.mulf %69, %70 : vector<2x128x128xf32>
    %72 = vector.shape_cast %58 : vector<2x128xf32> to vector<2x128x1xf32>
    %73 = vector.broadcast %72 : vector<2x128x1xf32> to vector<2x128x128xf32>
    %74 = arith.addf %71, %73 : vector<2x128x128xf32>
    %cst_19 = arith.constant dense<0xFF800000> : vector<2x128xf32>
    %75 = vector.multi_reduction <maximumf>, %66, %cst_19 [2] : vector<2x128x128xf32> to vector<2x128xf32>
    %76 = vector.shape_cast %75 : vector<2x128xf32> to vector<2x128x1xf32>
    %cst_20 = arith.constant dense<0xFF800000> : vector<2x128xf32>
    %77 = vector.multi_reduction <maximumf>, %74, %cst_20 [2] : vector<2x128x128xf32> to vector<2x128xf32>
    %78 = vector.shape_cast %77 : vector<2x128xf32> to vector<2x128x1xf32>
    %79 = arith.maximumf %76, %78 : vector<2x128x1xf32>
    %80 = vector.broadcast %79 : vector<2x128x1xf32> to vector<2x128x128xf32>
    %81 = arith.subf %66, %80 : vector<2x128x128xf32>
    %82 = math.exp %81 : vector<2x128x128xf32>
    %83 = vector.broadcast %79 : vector<2x128x1xf32> to vector<2x128x128xf32>
    %84 = arith.subf %74, %83 : vector<2x128x128xf32>
    %85 = math.exp %84 : vector<2x128x128xf32>
    %86 = vector.broadcast %39 : f32 to vector<2x128xf32>
    %87 = arith.mulf %86, %30 : vector<2x128xf32>
    %88 = vector.broadcast %40 : f32 to vector<2x128xf32>
    %89 = arith.addf %87, %88 : vector<2x128xf32>
    %90 = vector.broadcast %41 : f32 to vector<2x128xf32>
    %91 = arith.mulf %90, %12 : vector<2x128xf32>
    %92 = vector.broadcast %42 : f32 to vector<2x128xf32>
    %93 = arith.addf %91, %92 : vector<2x128xf32>
    %cst_21 = arith.constant dense<0.000000e+00> : vector<2x128xf32>
    %94 = vector.multi_reduction <add>, %82, %cst_21 [2] : vector<2x128x128xf32> to vector<2x128xf32>
    %cst_22 = arith.constant dense<0.000000e+00> : vector<2x128xf32>
    %95 = vector.multi_reduction <add>, %85, %cst_22 [2] : vector<2x128x128xf32> to vector<2x128xf32>
    %96 = arith.addf %94, %95 : vector<2x128xf32>
    %97 = vector.shape_cast %89 : vector<2x128xf32> to vector<2x1x128xf32>
    %98 = vector.broadcast %97 : vector<2x1x128xf32> to vector<2x128x128xf32>
    %99 = arith.mulf %82, %98 : vector<2x128x128xf32>
    %cst_23 = arith.constant dense<0.000000e+00> : vector<2x128xf32>
    %100 = vector.multi_reduction <add>, %99, %cst_23 [2] : vector<2x128x128xf32> to vector<2x128xf32>
    %101 = vector.shape_cast %93 : vector<2x128xf32> to vector<2x1x128xf32>
    %102 = vector.broadcast %101 : vector<2x1x128xf32> to vector<2x128x128xf32>
    %103 = arith.mulf %85, %102 : vector<2x128x128xf32>
    %cst_24 = arith.constant dense<0.000000e+00> : vector<2x128xf32>
    %104 = vector.multi_reduction <add>, %103, %cst_24 [2] : vector<2x128x128xf32> to vector<2x128xf32>
    %105 = arith.addf %100, %104 : vector<2x128xf32>
    %106 = tpu.reciprocal %96 {approx = true} : vector<2x128xf32> -> vector<2x128xf32>
    %107 = arith.mulf %105, %106 : vector<2x128xf32>
    %c0_25 = arith.constant 0 : index
    %c0_26 = arith.constant 0 : index
    %108 = vector.load %arg8[%c0_25, %c0_26] : memref<128x128xf32, #tpu.memory_space<vmem>>, vector<128x128xf32>
    %cst_27 = arith.constant dense<0.000000e+00> : vector<2x128xf32>
    %109 = tpu.matmul %107, %108, %cst_27 {dimension_numbers = #tpu.dot_dimension_numbers<[1], [0], [0], [1], [0, 0, 1, 1], [], []>} : vector<2x128xf32>, vector<128x128xf32>, vector<2x128xf32> -> vector<2x128xf32>
    %c0_28 = arith.constant 0 : index
    %c0_29 = arith.constant 0 : index
    %110 = vector.load %arg9[%c0_28, %c0_29] : memref<1x128xf32, #tpu.memory_space<vmem>>, vector<1x128xf32>
    %111 = vector.broadcast %110 : vector<1x128xf32> to vector<2x128xf32>
    %112 = arith.addf %109, %111 : vector<2x128xf32>
    %113 = arith.addf %112, %13 : vector<2x128xf32>
    %c0_30 = arith.constant 0 : index
    %c0_31 = arith.constant 0 : index
    %114 = vector.load %arg10[%c0_30, %c0_31] : memref<2x128xf32, #tpu.memory_space<vmem>>, vector<2x128xf32>
    tpu.vector_store %arg10[%c0_30, %c0_31], %113 {strides = array<i32>} : memref<2x128xf32, #tpu.memory_space<vmem>>, vector<2x128xf32>,
    return
  }
  func.func @transform_0(%arg0: i32) -> i32 {
    %c0_i32 = arith.constant 0 : i32
    %c0_i32_0 = arith.constant 0 : i32
    return %c0_i32 : i32
  }
  func.func @transform_1(%arg0: i32) -> (i32, i32) {
    %c0_i32 = arith.constant 0 : i32
    %c0_i32_0 = arith.constant 0 : i32
    return %arg0, %c0_i32 : i32, i32
  }
  func.func @transform_2(%arg0: i32) -> (i32, i32) {
    %c0_i32 = arith.constant 0 : i32
    %c0_i32_0 = arith.constant 0 : i32
    return %arg0, %c0_i32 : i32, i32
  }
  func.func @transform_3(%arg0: i32) -> (i32, i32) {
    %c0_i32 = arith.constant 0 : i32
    %c0_i32_0 = arith.constant 0 : i32
    %c0_i32_1 = arith.constant 0 : i32
    return %c0_i32, %c0_i32_0 : i32, i32
  }
  func.func @transform_4(%arg0: i32) -> (i32, i32) {
    %c0_i32 = arith.constant 0 : i32
    %c0_i32_0 = arith.constant 0 : i32
    %c0_i32_1 = arith.constant 0 : i32
    return %c0_i32, %c0_i32_0 : i32, i32
  }
  func.func @transform_5(%arg0: i32) -> (i32, i32) {
    %c0_i32 = arith.constant 0 : i32
    %c0_i32_0 = arith.constant 0 : i32
    %c0_i32_1 = arith.constant 0 : i32
    return %c0_i32, %c0_i32_0 : i32, i32
  }
  func.func @transform_6(%arg0: i32) -> (i32, i32) {
    %c0_i32 = arith.constant 0 : i32
    %c0_i32_0 = arith.constant 0 : i32
    %c0_i32_1 = arith.constant 0 : i32
    return %c0_i32, %c0_i32_0 : i32, i32
  }
  func.func @transform_7(%arg0: i32) -> (i32, i32) {
    %c0_i32 = arith.constant 0 : i32
    %c0_i32_0 = arith.constant 0 : i32
    %c0_i32_1 = arith.constant 0 : i32
    return %c0_i32, %c0_i32_0 : i32, i32
  }
  func.func @transform_8(%arg0: i32) -> (i32, i32) {
    %c0_i32 = arith.constant 0 : i32
    %c0_i32_0 = arith.constant 0 : i32
    %c0_i32_1 = arith.constant 0 : i32
    return %c0_i32, %c0_i32_0 : i32, i32
  }
  func.func @transform_9(%arg0: i32) -> (i32, i32) {
    %c0_i32 = arith.constant 0 : i32
    %c0_i32_0 = arith.constant 0 : i32
    return %arg0, %c0_i32 : i32, i32
  }
}

</mosaic_0001>

<bundles_post_ra>
// kernel: tpu_custom_call.1
= control target key start
LH: loop header
LB: loop body
LE: loop exit
PB: predicated region body
PF: predicated region fallthrough
CT: control target
= control target key end

     0   :  { %14 = vsyncpa [#allocation5], 0  ;;  %s3940_s0 = inlined_call_operand.hbm [shape: f32[12], index: 0, kind: input, shape index: {}]   ;;  %s3941_s1 = inlined_call_operand.hbm [shape: f32[2,16], index: 1, kind: input, shape index: {}]   ;;  %s3942_s2 = inlined_call_operand.vmem [shape: f32[2,32], index: 2, kind: input, shape index: {}]   ;;  %s3943_s3 = inlined_call_operand.hbm [shape: f32[16,256], index: 3, kind: input, shape index: {}]   ;;  %s3944_s4 = inlined_call_operand.vmem [shape: f32[1,256], index: 4, kind: input, shape index: {}]   ;;  %s3945_s5 = inlined_call_operand.hbm [shape: f32[32,128], index: 5, kind: input, shape index: {}]   ;;  %s3946_s6 = inlined_call_operand.vmem [shape: f32[1,128], index: 6, kind: input, shape index: {}]   ;;  %s3947_s7 = inlined_call_operand.hbm [shape: f32[128,128], index: 7, kind: input, shape index: {}]   ;;  %s3948_s8 = inlined_call_operand.vmem [shape: f32[1,128], index: 8, kind: input, shape index: {}]   ;;  %s3949_s9 = inlined_call_operand.hbm [shape: f32[2,128], index: 9, kind: output, shape index: {}]  }
   0x1   :  { %15 = vsyncpa [#allocation3], 0 }
   0x2   :  { %16 = vsyncpa [#allocation8], 0 }
   0x3   :  { %17 = vsyncpa [#allocation11], 0 }
   0x4   :  { %18 = vsyncpa [#allocation4], 0  ;;  %s2675_s30 = smov [#allocation7]  }
   0x5   :  { %s44_s10 = sshll.u32 %s2675_s30, 4  ;;  %s45_s10 = int_to_ptr.vmem [resolvable:$true] %s44_s10 }
   0x6   :  { %s2565_s11 = scalar_lea.vmem %s45_s10, 512  ;;  %p2570_p1 = scmp.lt.s32.totalorder %s45_s10, %s45_s10 }
   0x7   :  { %p2566_p0 = scmp.ne.s32.totalorder %s45_s10, %s2565_s11  ;;  %p2571_p2 = scmp.lt.s32.totalorder %s2565_s11, %s2565_s11 }
   0x9   :  { %p2572_p3 = por %p2571_p2, %p2570_p1 }
   0xb   :  { %p2573_p4 = pnand %p2572_p3, %p2566_p0 }
   0xd   :  { %2576 = shalt.err (!%p2573_p4)
}
   0xe   :  { %s2676_s12 = smov 256   ;;  %s2677_s13 = smov 16  }
   0xf   :  { %50 = dma.hbm_to_vmem [thread:$0]  %s3943_s3, 512, %s45_s10, [#allocation8], %s2676_s12, %s2676_s12, %s2677_s13  }
  0x10   :  { %s2678_s16 = smov [#allocation2]   ;;  %s2679_s19 = smov [#allocation6]  }
  0x11   :  { %26 = dma.hbm_to_smem %s3940_s0, 16, %s2678_s16, [#allocation5]  }
  0x12   :  { %s33_s20 = sshll.u32 %s2679_s19, 4  ;;  %s2680_s21 = smov [#allocation9]   ;;  %s34_s20 = int_to_ptr.vmem [resolvable:$true] %s33_s20 }
  0x13   :  { %s58_s22 = sshll.u32 %s2680_s21, 4  ;;  %s2593_s23 = scalar_lea.vmem %s34_s20, 32  ;;  %s59_s22 = int_to_ptr.vmem [resolvable:$true] %s58_s22 }
  0x14   :  { %p2594_p5 = scmp.ne.s32.totalorder %s34_s20, %s2593_s23  ;;  %p2598_p6 = scmp.lt.s32.totalorder %s34_s20, %s34_s20 }
  0x15   :  { %p2599_p7 = scmp.lt.s32.totalorder %s2593_s23, %s2593_s23 }
  0x17   :  { %p2600_p8 = por %p2599_p7, %p2598_p6 }
  0x19   :  { %p2601_p9 = pnand %p2600_p8, %p2594_p5 }
  0x1b   :  { %2604 = shalt.err (!%p2601_p9)
}
  0x1c   :  { %36 = dma.hbm_to_vmem [thread:$0]  %s3941_s1, 32, %s34_s20, [#allocation3]  }
  0x1d   :  { %s2613_s25 = scalar_lea.vmem %s59_s22, 512  ;;  %p2618_p11 = scmp.lt.s32.totalorder %s59_s22, %s59_s22 }
  0x1e   :  { %p2614_p10 = scmp.ne.s32.totalorder %s59_s22, %s2613_s25  ;;  %p2619_p12 = scmp.lt.s32.totalorder %s2613_s25, %s2613_s25 }
  0x20   :  { %p2620_p13 = por %p2619_p12, %p2618_p11 }
  0x22   :  { %p2621_p0 = pnand %p2620_p13, %p2614_p10 }
  0x24   :  { %2624 = shalt.err (!%p2621_p0)
}
  0x25   :  { %s2681_s0 = smov 128   ;;  %s2682_s26 = smov 8  }
  0x26   :  { %64 = dma.hbm_to_vmem [thread:$0]  %s3945_s5, 512, %s59_s22, [#allocation8], %s2681_s0, %s2681_s0, %s2682_s26  }
  0x27   :  { %s2683_s29 = smov [#allocation10]  }
  0x28   :  { %s72_s30 = sshll.u32 %s2683_s29, 4  ;;  %s73_s30 = int_to_ptr.vmem [resolvable:$true] %s72_s30 }
  0x29   :  { %s2633_s10 = scalar_lea.vmem %s73_s30, 2048  ;;  %p2638_p2 = scmp.lt.s32.totalorder %s73_s30, %s73_s30 }
  0x2a   :  { %p2634_p1 = scmp.ne.s32.totalorder %s73_s30, %s2633_s10  ;;  %p2639_p3 = scmp.lt.s32.totalorder %s2633_s10, %s2633_s10 }
  0x2c   :  { %p2640_p4 = por %p2639_p3, %p2638_p2 }
  0x2e   :  { %p2641_p5 = pnand %p2640_p4, %p2634_p1 }
  0x30   :  { %2644 = shalt.err (!%p2641_p5)
}
  0x31   :  { %78 = dma.hbm_to_vmem [thread:$0]  %s3947_s7, 2048, %s73_s30, [#allocation11], %s2681_s0, %s2681_s0, %s2682_s26  }
  0x32   :  { %2665 = dma.done.wait [#allocation5], 16  }
  0x33   :  { %2666 = vsyncadd [#allocation5], 4294967280 }
  0x34   :  { %2667 = dma.done.wait [#allocation3], 32  }
  0x35   :  { %2668 = vsyncadd [#allocation3], 4294967264 }
  0x36   :  { %2669 = dma.done.wait [#allocation8], 1024  }
  0x37   :  { %2670 = vsyncadd [#allocation8], 4294966272 }
  0x38   :  { %2671 = dma.done.wait [#allocation11], 2048  }
  0x39   :  { %2672 = vsyncadd [#allocation11], 4294965248 }
  0x3a   :  { %96 = sfence }
  0x3b   :  { %v102_v0 = vld [vmem:[#allocation7 + $0x18] sm:$0xff]  ;;  %v101_v1 = vld [vmem:[#allocation7 + $0x10] sm:$0xff]  ;;  %v100_v2 = vld [vmem:[#allocation7 + $0x8] sm:$0xff]  ;;  %v3951_v4 = vmov 0.0   ;;  %vm115_vm0 = vcmask 130048   ;;  %vm2685_vm1 = vmmov 0   ;;  %v3950_v17 = vlaneseq }
  0x3c   :  { %147 = vmatprep.subr.mxu1 %v102_v0  ;;  %v99_v3 = vld [vmem:[#allocation7] sm:$0xff]  ;;  %183 = vmatprep.mubr.f32.mxu1 %v3951_v4  ;;  %v97_v5 = vld [vmem:[#allocation6] sm:$0x3]  ;;  %v201_v9 = vld [vmem:[#allocation9 + $0x10] sm:$0xff]  ;;  %vm210_vm2 = vcmask 261120   ;;  %s290_s13 = sld [smem:[#allocation2]] }
  0x3d   :  { %148 = vmatpush1.msra.mxu1 %v101_v1  ;;  %2308 = vmatprep.subr.mxu0 %v3951_v4  ;;  %v202_v6 = vld [vmem:[#allocation9 + $0x18] sm:$0xff]  ;;  %v200_v11 = vld [vmem:[#allocation9 + $0x8] sm:$0xff]  ;;  %v199_v12 = vld [vmem:[#allocation9] sm:$0xff]  ;;  %v2765_v18 = vshrl.u32 %v3950_v17, 7  ;;  %s2263_s14 = sld [smem:[#allocation2 + $0x1]]  ;;  %vm1988_vm4 = vcmask 130112  }
  0x3e   :  { %149 = vmatprep.subr.mxu1 %v100_v2  ;;  %v98_v7 = vld [vmem:[%s3942_s2] sm:$0x3]  ;;  %2340 = vmatprep.mubr.msk.f32.mxu0 %vm2685_vm1, %v3951_v4  ;;  %s2264_s15 = sld [smem:[#allocation2 + $0x2]]  ;;  %vm1995_vm5 = vcmask 195712   ;;  %vm2002_vm6 = vcmask 261312   ;;  %vm2009_vm7 = vcmask 326912  }
  0x3f   :  { %150 = vmatpush1.msra.mxu1 %v99_v3  ;;  %v193_v8 = vsub.f32 0.0, %v98_v7  ;;  %3998 = vst [vmem:[#allocation18_spill] sm:$0xff] %v2765_v18  ;;  %v2768_v19 = vsub.s32 0, %v2765_v18  ;;  %v103_v20 = vld [vmem:[%s3944_s4] sm:$0x3]  ;;  %v2783_v34 = vsub.s32 1, %v2765_v18 }
  0x40   :  { %2260 = vmatmul.mubr.msk.f32.vlgmr.msra.gmra.mxu1 %vm115_vm0, %v97_v5  ;;  %2297 = vmatprep.subr.mxu1 %v3951_v4  ;;  %s2265_s16 = sld [smem:[#allocation2 + $0x3]]  ;;  %vm2016_vm8 = vcmask 392512   ;;  %vm2023_vm9 = vcmask 458112   ;;  %vm2030_vm10 = vcmask 523712   ;;  %vm2037_vm11 = vcmask 589312   ;;  %s2687_s28 = smov [#allocation12]  }
  0x41   :  { %2298 = vmatpush3.msra.mxu1 %v202_v6  ;;  %2305 = vmatprep.mubr.msk.f32.mxu1 %vm2685_vm1, %v3951_v4  ;;  %v194_v10 = vmul.f32 1.442695, %v193_v8  ;;  %3999 = vst [vmem:[#allocation19_spill] sm:$0xff] %v2768_v19  ;;  %v108_v21 = vrot.slane %v103_v20, %v2768_v19  ;;  %4002 = vst [vmem:[#allocation22_spill] sm:$0xff] %v2783_v34  ;;  %s2266_s17 = sld [smem:[#allocation2 + $0x4]]  ;;  %vm2044_vm12 = vcmask 654912  }
  0x42   :  { %2299 = vmatprep.subr.mxu1 %v3951_v4  ;;  %v302_v25 = vstv %s290_s13  ;;  %s2267_s18 = sld [smem:[#allocation2 + $0x5]]  ;;  %vm2051_vm13 = vcmask 720512   ;;  %vm2058_vm14 = vcmask 786112   ;;  %vm2065_vm15 = vcmask 851712   ;;  %s2248_s29 = sshll.u32 %s2687_s28, 4  ;;  %s2249_s29 = int_to_ptr.vmem [resolvable:$true] %s2248_s29 }
  0x43   :  { %2300 = vmatpush3.msra.mxu1 %v201_v9  ;;  %2356 = vpow2.f32 %v194_v10  ;;  %v304_v27 = vstv %s2263_s14  ;;  %s2268_s19 = sld [smem:[#allocation2 + $0x6]]  ;;  %vm2072_vm0 = vcmask 917312   ;;  %vm2079_vm1 = vcmask 982912   ;;  %s2645_s30 = scalar_lea.vmem %s2249_s29, 32 }
  0x44   :  { %2301 = vmatprep.subr.mxu1 %v3951_v4  ;;  %v306_v36 = vstv %s2264_s15  ;;  %s2269_s20 = sld [smem:[#allocation2 + $0x7]]  ;;  %p2646_p6 = scmp.ne.s32.totalorder %s2249_s29, %s2645_s30 }
  0x45   :  { %2302 = vmatpush3.msra.mxu1 %v200_v11  ;;  %s2271_s23 = sld [smem:[#allocation2 + $0x9]]  ;;  %p2650_p7 = scmp.lt.s32.totalorder %s2249_s29, %s2249_s29 }
  0x46   :  { %2303 = vmatprep.subr.mxu1 %v3951_v4  ;;  %v308_v38 = vstv %s2265_s16  ;;  %s2272_s24 = sld [smem:[#allocation2 + $0xa]]  ;;  %p2651_p8 = scmp.lt.s32.totalorder %s2645_s30, %s2645_s30 }
  0x47   :  { %2304 = vmatpush3.msra.mxu1 %v199_v12  ;;  %v310_v44 = vstv %s2266_s17  ;;  %s2273_s3 = sld [smem:[#allocation2 + $0xb]] }
  0x48   :  { %v312_v48 = vstv %s2267_s18  ;;  %p2652_p9 = por %p2651_p8, %p2650_p7 }
  0x4a   :  { %p2653_p10 = pnand %p2652_p9, %p2646_p6 }
  0x50   :  { %v2357_v13 = vpop.eup %2356 }
  0x51   :  { %v196_v14 = vadd.f32 1.0, %v2357_v13 }
  0x53   :  { %2358 = vrcp.f32 %v196_v14 }
  0x60   :  { %v2359_v15 = vpop.eup %2358 }
  0x61   :  { %v198_v16 = vmul.f32 %v2359_v15, %v98_v7 }
  0x63   :  { %2306 = vmatmul.mubr.msk.f32.vlgmr.msra.gmra.mxu1 %vm210_vm2, %v198_v16  ;;  %vm2086_vm2 = vcmask 1048512  }
 0x100   :  { %v185_v22 = vpop.f32.mrf.mxu1 }
 0x101   :  { %v186_v23 = vadd.f32 %v185_v22, %v108_v21  ;;  %v314_v22 = vstv %s2268_s19 }
 0x102   :  { %v2778_v31 = vpop.f32.mrf.mxu1 }
 0x103   :  { %vm190_vm3 = vcmp.ge.f32.partialorder %v186_v23, 0.0  ;;  %v191_v24 = vmul.f32 0.01, %v186_v23  ;;  %4001 = vst [vmem:[#allocation21_spill] sm:$0xff] %v2778_v31 }
 0x105   :  { %v2774_v26 = vsel %vm190_vm3, %v186_v23, %v191_v24  ;;  %vm2167_vm3 = vcmask 1041409  }
 0x106   :  { %4000 = vst [vmem:[#allocation20_spill] sm:$0xff] %v2774_v26  ;;  %v303_v28 = vmul.f32 %v302_v25, %v2774_v26  ;;  %v307_v37 = vmul.f32 %v306_v36, %v2774_v26  ;;  %v311_v45 = vmul.f32 %v310_v44, %v2774_v26  ;;  %v315_v23 = vmul.f32 %v314_v22, %v2774_v26  ;;  %v2261_v22 = vld [vmem:[%s3946_s6] ss:$0 sm:$0xff]  ;;  %s2270_s6 = sld [smem:[#allocation2 + $0x8]] }
 0x108   :  { %v305_v29 = vadd.f32 %v304_v27, %v303_v28  ;;  %v309_v39 = vadd.f32 %v308_v38, %v307_v37  ;;  %v313_v49 = vadd.f32 %v312_v48, %v311_v45  ;;  %v316_v27 = vstv %s2269_s20 }
 0x109   :  { %v317_v28 = vadd.f32 %v316_v27, %v315_v23 }
 0x10a   :  { %v321_v30 = vrot.slane %v305_v29, %v2768_v19  ;;  %v388_v35 = vrot.slane %v305_v29, %v2783_v34  ;;  %v520_v40 = vrot.slane %v309_v39, %v2768_v19  ;;  %v587_v41 = vrot.slane %v309_v39, %v2783_v34 }
 0x10b   :  { %v686_v52 = vrot.slane %v313_v49, %v2768_v19  ;;  %v753_v6 = vrot.slane %v313_v49, %v2783_v34  ;;  %v952_v39 = vrot.slane %v317_v28, %v2783_v34 }
 0x10c   :  { %331 = vbcast.lane.b32.xlu1 %v321_v30, 272  ;;  %323 = vbcast.lane.b32.xlu0 %v321_v30, 256 }
 0x110   :  { %335 = vbcast.lane.b32.xlu1 %v321_v30, 280  ;;  %327 = vbcast.lane.b32.xlu0 %v321_v30, 264 }
 0x114   :  { %343 = vbcast.lane.b32.xlu1 %v321_v30, 296  ;;  %339 = vbcast.lane.b32.xlu0 %v321_v30, 288 }
 0x118   :  { %351 = vbcast.lane.b32.xlu1 %v321_v30, 312  ;;  %347 = vbcast.lane.b32.xlu0 %v321_v30, 304 }
 0x11c   :  { %359 = vbcast.lane.b32.xlu1 %v321_v30, 328  ;;  %355 = vbcast.lane.b32.xlu0 %v321_v30, 320 }
 0x120   :  { %367 = vbcast.lane.b32.xlu1 %v321_v30, 344  ;;  %363 = vbcast.lane.b32.xlu0 %v321_v30, 336 }
 0x123   :  { %v2780_v32 = vpop.f32.mrf.mxu1 }
 0x124   :  { %375 = vbcast.lane.b32.xlu1 %v321_v30, 360  ;;  %371 = vbcast.lane.b32.xlu0 %v321_v30, 352 }
 0x125   :  { %v2307_v33 = vpop.f32.mrf.mxu1 }
 0x126   :  { %v2870_v33 = vrot.slane %v317_v28, %v2768_v19  ;;  %v281_v28 = vadd.f32 %v2261_v22, %v2780_v32 }
 0x128   :  { %383 = vbcast.lane.b32.xlu1 %v321_v30, 376  ;;  %379 = vbcast.lane.b32.xlu0 %v321_v30, 368  ;;  %v284_v31 = vsub.f32 0.0, %v281_v28 }
 0x12c   :  { %394 = vbcast.lane.b32.xlu1 %v388_v35, 264  ;;  %390 = vbcast.lane.b32.xlu0 %v388_v35, 256 }
 0x130   :  { %402 = vbcast.lane.b32.xlu1 %v388_v35, 280  ;;  %398 = vbcast.lane.b32.xlu0 %v388_v35, 272 }
 0x134   :  { %410 = vbcast.lane.b32.xlu1 %v388_v35, 296  ;;  %406 = vbcast.lane.b32.xlu0 %v388_v35, 288 }
 0x138   :  { %418 = vbcast.lane.b32.xlu1 %v388_v35, 312  ;;  %414 = vbcast.lane.b32.xlu0 %v388_v35, 304 }
 0x13c   :  { %426 = vbcast.lane.b32.xlu1 %v388_v35, 328  ;;  %422 = vbcast.lane.b32.xlu0 %v388_v35, 320 }
 0x140   :  { %434 = vbcast.lane.b32.xlu1 %v388_v35, 344  ;;  %430 = vbcast.lane.b32.xlu0 %v388_v35, 336 }
 0x144   :  { %442 = vbcast.lane.b32.xlu1 %v388_v35, 360  ;;  %438 = vbcast.lane.b32.xlu0 %v388_v35, 352 }
 0x148   :  { %450 = vbcast.lane.b32.xlu1 %v388_v35, 376  ;;  %446 = vbcast.lane.b32.xlu0 %v388_v35, 368 }
 0x14c   :  { %526 = vbcast.lane.b32.xlu1 %v520_v40, 264  ;;  %522 = vbcast.lane.b32.xlu0 %v520_v40, 256 }
 0x150   :  { %534 = vbcast.lane.b32.xlu1 %v520_v40, 280  ;;  %530 = vbcast.lane.b32.xlu0 %v520_v40, 272 }
 0x154   :  { %542 = vbcast.lane.b32.xlu1 %v520_v40, 296  ;;  %538 = vbcast.lane.b32.xlu0 %v520_v40, 288 }
 0x158   :  { %550 = vbcast.lane.b32.xlu1 %v520_v40, 312  ;;  %546 = vbcast.lane.b32.xlu0 %v520_v40, 304 }
 0x15c   :  { %558 = vbcast.lane.b32.xlu1 %v520_v40, 328  ;;  %554 = vbcast.lane.b32.xlu0 %v520_v40, 320 }
 0x160   :  { %566 = vbcast.lane.b32.xlu1 %v520_v40, 344  ;;  %562 = vbcast.lane.b32.xlu0 %v520_v40, 336 }
 0x164   :  { %574 = vbcast.lane.b32.xlu1 %v520_v40, 360  ;;  %570 = vbcast.lane.b32.xlu0 %v520_v40, 352 }
 0x168   :  { %582 = vbcast.lane.b32.xlu1 %v520_v40, 376  ;;  %578 = vbcast.lane.b32.xlu0 %v520_v40, 368 }
 0x16c   :  { %593 = vbcast.lane.b32.xlu1 %v587_v41, 264  ;;  %589 = vbcast.lane.b32.xlu0 %v587_v41, 256 }
 0x170   :  { %601 = vbcast.lane.b32.xlu1 %v587_v41, 280  ;;  %597 = vbcast.lane.b32.xlu0 %v587_v41, 272 }
 0x174   :  { %609 = vbcast.lane.b32.xlu1 %v587_v41, 296  ;;  %605 = vbcast.lane.b32.xlu0 %v587_v41, 288 }
 0x178   :  { %617 = vbcast.lane.b32.xlu1 %v587_v41, 312  ;;  %613 = vbcast.lane.b32.xlu0 %v587_v41, 304 }
 0x17c   :  { %625 = vbcast.lane.b32.xlu1 %v587_v41, 328  ;;  %621 = vbcast.lane.b32.xlu0 %v587_v41, 320 }
 0x17e   :  { %v2789_v42 = vpop.permute.xlu1 %331  ;;  %v2791_v43 = vpop.permute.xlu0 %323 }
 0x180   :  { %633 = vbcast.lane.b32.xlu1 %v587_v41, 344  ;;  %629 = vbcast.lane.b32.xlu0 %v587_v41, 336 }
 0x182   :  { %v2794_v46 = vpop.permute.xlu1 %335  ;;  %v2796_v47 = vpop.permute.xlu0 %327 }
 0x184   :  { %641 = vbcast.lane.b32.xlu1 %v587_v41, 360  ;;  %637 = vbcast.lane.b32.xlu0 %v587_v41, 352 }
 0x186   :  { %v2798_v50 = vpop.permute.xlu1 %343  ;;  %v2800_v51 = vpop.permute.xlu0 %339 }
 0x188   :  { %649 = vbcast.lane.b32.xlu1 %v587_v41, 376  ;;  %645 = vbcast.lane.b32.xlu0 %v587_v41, 368 }
 0x18a   :  { %v2803_v53 = vpop.permute.xlu1 %351  ;;  %v2805_v54 = vpop.permute.xlu0 %347 }
 0x18c   :  { %692 = vbcast.lane.b32.xlu1 %v686_v52, 264  ;;  %688 = vbcast.lane.b32.xlu0 %v686_v52, 256 }
 0x18e   :  { %v2807_v55 = vpop.permute.xlu1 %359  ;;  %v2809_v56 = vpop.permute.xlu0 %355 }
 0x18f   :  { %4003 = vst [vmem:[#allocation23_spill] sm:$0xff] %v2807_v55 }
 0x190   :  { %700 = vbcast.lane.b32.xlu1 %v686_v52, 280  ;;  %696 = vbcast.lane.b32.xlu0 %v686_v52, 272 }
 0x192   :  { %v2811_v57 = vpop.permute.xlu1 %367  ;;  %v2813_v58 = vpop.permute.xlu0 %363 }
 0x193   :  { %4004 = vst [vmem:[#allocation24_spill] sm:$0xff] %v2811_v57  ;;  %4005 = vst [vmem:[#allocation25_spill] sm:$0xff] %v2813_v58 }
 0x194   :  { %708 = vbcast.lane.b32.xlu1 %v686_v52, 296  ;;  %704 = vbcast.lane.b32.xlu0 %v686_v52, 288 }
 0x196   :  { %v2815_v59 = vpop.permute.xlu1 %375  ;;  %v2817_v60 = vpop.permute.xlu0 %371 }
 0x197   :  { %4006 = vst [vmem:[#allocation26_spill] sm:$0xff] %v2815_v59  ;;  %4007 = vst [vmem:[#allocation27_spill] sm:$0xff] %v2817_v60  ;;  %v2686_v60 = vmov 1966171168  }
 0x198   :  { %716 = vbcast.lane.b32.xlu1 %v686_v52, 312  ;;  %712 = vbcast.lane.b32.xlu0 %v686_v52, 304 }
 0x19a   :  { %v2819_v61 = vpop.permute.xlu1 %383  ;;  %v2821_v62 = vpop.permute.xlu0 %379 }
 0x19b   :  { %4008 = vst [vmem:[#allocation28_spill] sm:$0xff] %v2819_v61  ;;  %4009 = vst [vmem:[#allocation29_spill] sm:$0xff] %v2821_v62 }
 0x19c   :  { %724 = vbcast.lane.b32.xlu1 %v686_v52, 328  ;;  %720 = vbcast.lane.b32.xlu0 %v686_v52, 320 }
 0x19e   :  { %v2823_v63 = vpop.permute.xlu1 %394  ;;  %v2825_v0 = vpop.permute.xlu0 %390 }
 0x1a0   :  { %732 = vbcast.lane.b32.xlu1 %v686_v52, 344  ;;  %728 = vbcast.lane.b32.xlu0 %v686_v52, 336 }
 0x1a2   :  { %v2827_v1 = vpop.permute.xlu1 %402  ;;  %v2829_v2 = vpop.permute.xlu0 %398 }
 0x1a4   :  { %740 = vbcast.lane.b32.xlu1 %v686_v52, 360  ;;  %736 = vbcast.lane.b32.xlu0 %v686_v52, 352 }
 0x1a6   :  { %v2831_v3 = vpop.permute.xlu1 %410  ;;  %v2833_v5 = vpop.permute.xlu0 %406 }
 0x1a8   :  { %748 = vbcast.lane.b32.xlu1 %v686_v52, 376  ;;  %744 = vbcast.lane.b32.xlu0 %v686_v52, 368 }
 0x1aa   :  { %v2836_v7 = vpop.permute.xlu1 %418  ;;  %v2838_v8 = vpop.permute.xlu0 %414 }
 0x1ac   :  { %759 = vbcast.lane.b32.xlu1 %v753_v6, 264  ;;  %755 = vbcast.lane.b32.xlu0 %v753_v6, 256 }
 0x1ae   :  { %v2840_v9 = vpop.permute.xlu1 %426  ;;  %v2842_v10 = vpop.permute.xlu0 %422 }
 0x1af   :  { %4010 = vst [vmem:[#allocation30_spill] sm:$0xff] %v2840_v9 }
 0x1b0   :  { %767 = vbcast.lane.b32.xlu1 %v753_v6, 280  ;;  %763 = vbcast.lane.b32.xlu0 %v753_v6, 272 }
 0x1b2   :  { %v2844_v11 = vpop.permute.xlu1 %434  ;;  %v2846_v12 = vpop.permute.xlu0 %430 }
 0x1b3   :  { %4011 = vst [vmem:[#allocation31_spill] sm:$0xff] %v2844_v11  ;;  %4012 = vst [vmem:[#allocation32_spill] sm:$0xff] %v2846_v12 }
 0x1b4   :  { %775 = vbcast.lane.b32.xlu1 %v753_v6, 296  ;;  %771 = vbcast.lane.b32.xlu0 %v753_v6, 288 }
 0x1b6   :  { %v2848_v13 = vpop.permute.xlu1 %442  ;;  %v2850_v14 = vpop.permute.xlu0 %438 }
 0x1b7   :  { %4013 = vst [vmem:[#allocation33_spill] sm:$0xff] %v2848_v13  ;;  %4014 = vst [vmem:[#allocation34_spill] sm:$0xff] %v2850_v14 }
 0x1b8   :  { %783 = vbcast.lane.b32.xlu1 %v753_v6, 312  ;;  %779 = vbcast.lane.b32.xlu0 %v753_v6, 304 }
 0x1ba   :  { %v2852_v15 = vpop.permute.xlu1 %450  ;;  %v2854_v16 = vpop.permute.xlu0 %446 }
 0x1bb   :  { %4015 = vst [vmem:[#allocation35_spill] sm:$0xff] %v2852_v15  ;;  %4016 = vst [vmem:[#allocation36_spill] sm:$0xff] %v2854_v16  ;;  %v285_v15 = vmul.f32 1.442695, %v284_v31 }
 0x1bc   :  { %791 = vbcast.lane.b32.xlu1 %v753_v6, 328  ;;  %787 = vbcast.lane.b32.xlu0 %v753_v6, 320 }
 0x1bd   :  { %2360 = vpow2.f32 %v285_v15 }
 0x1be   :  { %v2856_v20 = vpop.permute.xlu1 %526  ;;  %v2858_v21 = vpop.permute.xlu0 %522 }
 0x1c0   :  { %799 = vbcast.lane.b32.xlu1 %v753_v6, 344  ;;  %795 = vbcast.lane.b32.xlu0 %v753_v6, 336 }
 0x1c2   :  { %v2861_v24 = vpop.permute.xlu1 %534  ;;  %v2863_v25 = vpop.permute.xlu0 %530 }
 0x1c4   :  { %807 = vbcast.lane.b32.xlu1 %v753_v6, 360  ;;  %803 = vbcast.lane.b32.xlu0 %v753_v6, 352 }
 0x1c6   :  { %v2865_v29 = vpop.permute.xlu1 %542  ;;  %v2867_v30 = vpop.permute.xlu0 %538 }
 0x1c8   :  { %815 = vbcast.lane.b32.xlu1 %v753_v6, 376  ;;  %811 = vbcast.lane.b32.xlu0 %v753_v6, 368 }
 0x1ca   :  { %v2872_v35 = vpop.permute.xlu1 %550  ;;  %v2874_v36 = vpop.permute.xlu0 %546 }
 0x1cc   :  { %891 = vbcast.lane.b32.xlu1 %v2870_v33, 264  ;;  %887 = vbcast.lane.b32.xlu0 %v2870_v33, 256 }
 0x1ce   :  { %v2878_v37 = vpop.permute.xlu1 %558  ;;  %v2880_v38 = vpop.permute.xlu0 %554 }
 0x1cf   :  { %4017 = vst [vmem:[#allocation37_spill] sm:$0xff] %v2878_v37 }
 0x1d0   :  { %899 = vbcast.lane.b32.xlu1 %v2870_v33, 280  ;;  %895 = vbcast.lane.b32.xlu0 %v2870_v33, 272 }
 0x1d2   :  { %v2885_v40 = vpop.permute.xlu1 %566  ;;  %v2887_v41 = vpop.permute.xlu0 %562 }
 0x1d3   :  { %4018 = vst [vmem:[#allocation38_spill] sm:$0xff] %v2885_v40  ;;  %4019 = vst [vmem:[#allocation39_spill] sm:$0xff] %v2887_v41 }
 0x1d4   :  { %958 = vbcast.lane.b32.xlu1 %v952_v39, 264  ;;  %954 = vbcast.lane.b32.xlu0 %v952_v39, 256 }
 0x1d6   :  { %v2889_v44 = vpop.permute.xlu1 %574  ;;  %v2891_v45 = vpop.permute.xlu0 %570 }
 0x1d7   :  { %4020 = vst [vmem:[#allocation40_spill] sm:$0xff] %v2889_v44  ;;  %4021 = vst [vmem:[#allocation41_spill] sm:$0xff] %v2891_v45  ;;  %v2361_v44 = vpop.eup %2360 }
 0x1d8   :  { %966 = vbcast.lane.b32.xlu1 %v952_v39, 280  ;;  %962 = vbcast.lane.b32.xlu0 %v952_v39, 272  ;;  %v287_v45 = vadd.f32 1.0, %v2361_v44 }
 0x1da   :  { %v2893_v48 = vpop.permute.xlu1 %582  ;;  %v2895_v49 = vpop.permute.xlu0 %578  ;;  %2362 = vrcp.f32 %v287_v45 }
 0x1db   :  { %4022 = vst [vmem:[#allocation42_spill] sm:$0xff] %v2893_v48  ;;  %4023 = vst [vmem:[#allocation43_spill] sm:$0xff] %v2895_v49 }
 0x1dc   :  { %970 = vbcast.lane.b32.xlu1 %v952_v39, 288  ;;  %903 = vbcast.lane.b32.xlu0 %v2870_v33, 288 }
 0x1de   :  { %v2898_v52 = vpop.permute.xlu1 %593  ;;  %v2900_v6 = vpop.permute.xlu0 %589 }
 0x1e0   :  { %974 = vbcast.lane.b32.xlu1 %v952_v39, 296  ;;  %907 = vbcast.lane.b32.xlu0 %v2870_v33, 296 }
 0x1e2   :  { %v2906_v23 = vpop.permute.xlu1 %601  ;;  %v2908_v27 = vpop.permute.xlu0 %597 }
 0x1e4   :  { %978 = vbcast.lane.b32.xlu1 %v952_v39, 304  ;;  %911 = vbcast.lane.b32.xlu0 %v2870_v33, 304 }
 0x1e6   :  { %v2912_v17 = vpop.permute.xlu1 %609  ;;  %v2914_v4 = vpop.permute.xlu0 %605 }
 0x1e7   :  { %v2363_v45 = vpop.eup %2362 }
 0x1e8   :  { %982 = vbcast.lane.b32.xlu1 %v952_v39, 312  ;;  %915 = vbcast.lane.b32.xlu0 %v2870_v33, 312  ;;  %v2969_v12 = vmul.f32 %v2363_v45, %v281_v28 }
 0x1ea   :  { %v2917_v34 = vpop.permute.xlu1 %617  ;;  %v2919_v48 = vpop.permute.xlu0 %613  ;;  %4034 = vst [vmem:[#allocation54_spill] sm:$0xff] %v2969_v12 }
 0x1ec   :  { %986 = vbcast.lane.b32.xlu1 %v952_v39, 320  ;;  %919 = vbcast.lane.b32.xlu0 %v2870_v33, 320 }
 0x1ee   :  { %v2922_v32 = vpop.permute.xlu1 %625  ;;  %v2924_v22 = vpop.permute.xlu0 %621 }
 0x1ef   :  { %4024 = vst [vmem:[#allocation44_spill] sm:$0xff] %v2922_v32 }
 0x1f0   :  { %990 = vbcast.lane.b32.xlu1 %v952_v39, 328  ;;  %923 = vbcast.lane.b32.xlu0 %v2870_v33, 328 }
 0x1f2   :  { %v2927_v61 = vpop.permute.xlu1 %633  ;;  %v2929_v49 = vpop.permute.xlu0 %629 }
 0x1f3   :  { %4025 = vst [vmem:[#allocation45_spill] sm:$0xff] %v2927_v61  ;;  %4026 = vst [vmem:[#allocation46_spill] sm:$0xff] %v2929_v49  ;;  %v454_v61 = vunpack.c.l.s4 %v2686_v60 }
 0x1f4   :  { %994 = vbcast.lane.b32.xlu1 %v952_v39, 336  ;;  %927 = vbcast.lane.b32.xlu0 %v2870_v33, 336 }
 0x1f5   :  { %v455_v57 = vunpack.c.0.s8 %v454_v61 }
 0x1f6   :  { %v2932_v16 = vpop.permute.xlu1 %641  ;;  %v2934_v31 = vpop.permute.xlu0 %637 }
 0x1f7   :  { %4027 = vst [vmem:[#allocation47_spill] sm:$0xff] %v2932_v16  ;;  %4028 = vst [vmem:[#allocation48_spill] sm:$0xff] %v2934_v31 }
 0x1f8   :  { %998 = vbcast.lane.b32.xlu1 %v952_v39, 344  ;;  %931 = vbcast.lane.b32.xlu0 %v2870_v33, 344 }
 0x1fa   :  { %v2937_v62 = vpop.permute.xlu1 %649  ;;  %v2939_v15 = vpop.permute.xlu0 %645 }
 0x1fb   :  { %4029 = vst [vmem:[#allocation49_spill] sm:$0xff] %v2937_v62  ;;  %4030 = vst [vmem:[#allocation50_spill] sm:$0xff] %v2939_v15 }
 0x1fc   :  { %1002 = vbcast.lane.b32.xlu1 %v952_v39, 352  ;;  %935 = vbcast.lane.b32.xlu0 %v2870_v33, 352 }
 0x1fe   :  { %v2942_v13 = vpop.permute.xlu1 %692  ;;  %v2944_v59 = vpop.permute.xlu0 %688 }
 0x200   :  { %1006 = vbcast.lane.b32.xlu1 %v952_v39, 360  ;;  %939 = vbcast.lane.b32.xlu0 %v2870_v33, 360 }
 0x202   :  { %v2947_v16 = vpop.permute.xlu1 %700  ;;  %v2949_v31 = vpop.permute.xlu0 %696 }
 0x204   :  { %1010 = vbcast.lane.b32.xlu1 %v952_v39, 368  ;;  %943 = vbcast.lane.b32.xlu0 %v2870_v33, 368 }
 0x206   :  { %v2952_v62 = vpop.permute.xlu1 %708  ;;  %v2954_v15 = vpop.permute.xlu0 %704 }
 0x208   :  { %1014 = vbcast.lane.b32.xlu1 %v952_v39, 376  ;;  %947 = vbcast.lane.b32.xlu0 %v2870_v33, 376  ;;  %v2972_v33 = vsub.s32 %v455_v57, %v2765_v18 }
 0x20a   :  { %v2957_v14 = vpop.permute.xlu1 %716  ;;  %v2959_v44 = vpop.permute.xlu0 %712  ;;  %4035 = vst [vmem:[#allocation55_spill] sm:$0xff] %v2972_v33  ;;  %v459_v60 = vrot.slane %v2969_v12, %v2972_v33 }
 0x20c   :  { %v460_v61 = vcombine.high %v459_v60, %v459_v60 }
 0x20e   :  { %v2961_v40 = vpop.permute.xlu1 %724  ;;  %v2963_v11 = vpop.permute.xlu0 %720  ;;  %v474_v45 = vrot.slane %v460_v61, %v2972_v33 }
 0x20f   :  { %4031 = vst [vmem:[#allocation51_spill] sm:$0xff] %v2961_v40 }
 0x212   :  { %v2965_v49 = vpop.permute.xlu1 %732  ;;  %v2967_v41 = vpop.permute.xlu0 %728 }
 0x213   :  { %4032 = vst [vmem:[#allocation52_spill] sm:$0xff] %v2965_v49  ;;  %4033 = vst [vmem:[#allocation53_spill] sm:$0xff] %v2967_v41  ;;  %v467_v49 = vrot.slane %v459_v60, %v2972_v33 }
 0x215   :  { %v2987_v57 = vrot.slane %v467_v49, %v2768_v19 }
 0x216   :  { %v2974_v39 = vpop.permute.xlu1 %740  ;;  %v2976_v58 = vpop.permute.xlu0 %736 }
 0x217   :  { %4036 = vst [vmem:[#allocation56_spill] sm:$0xff] %v2974_v39  ;;  %4037 = vst [vmem:[#allocation57_spill] sm:$0xff] %v2976_v58  ;;  %v2992_v58 = vrot.slane %v474_v45, %v2768_v19  ;;  %v485_v12 = vmul.f32 %v2987_v57, %v2791_v43  ;;  %v486_v61 = vmul.f32 %v2987_v57, %v2796_v47 }
 0x219   :  { %v501_v49 = vmul.f32 %v2992_v58, %v2825_v0  ;;  %v3012_v43 = vadd.f32 %v2856_v20, %v486_v61  ;;  %v502_v37 = vmul.f32 %v2992_v58, %v2823_v63  ;;  %v824_v63 = vrot.slane %v2774_v26, %v2972_v33 }
 0x21a   :  { %v2980_v40 = vpop.permute.xlu1 %748  ;;  %v2982_v32 = vpop.permute.xlu0 %744 }
 0x21b   :  { %4038 = vst [vmem:[#allocation58_spill] sm:$0xff] %v2980_v40  ;;  %4039 = vst [vmem:[#allocation59_spill] sm:$0xff] %v2982_v32  ;;  %v2997_v40 = vadd.f32 %v2858_v21, %v485_v12  ;;  %v3009_v45 = vadd.f32 %v2900_v6, %v501_v49  ;;  %v3023_v0 = vadd.f32 %v2898_v52, %v502_v37 }
 0x21c   :  { %4042 = vst [vmem:[#allocation62_spill] sm:$0xff] %v3012_v43  ;;  %v832_v37 = vrot.slane %v824_v63, %v2972_v33 }
 0x21d   :  { %4040 = vst [vmem:[#allocation60_spill] sm:$0xff] %v2997_v40  ;;  %4041 = vst [vmem:[#allocation61_spill] sm:$0xff] %v3009_v45 }
 0x21e   :  { %v760_v41 = vpop.permute.xlu1 %759  ;;  %v756_v28 = vpop.permute.xlu0 %755  ;;  %4043 = vst [vmem:[#allocation63_spill] sm:$0xff] %v3023_v0 }
 0x222   :  { %v2989_v18 = vpop.permute.xlu1 %767  ;;  %v764_v39 = vpop.permute.xlu0 %763 }
 0x226   :  { %v2999_v60 = vpop.permute.xlu1 %775  ;;  %v3001_v32 = vpop.permute.xlu0 %771 }
 0x227   :  { %1048 = vmax.xlane.f32.xlu0 %v2997_v40  ;;  %v825_v40 = vcombine.high %v824_v63, %v824_v63 }
 0x22a   :  { %v3014_v12 = vpop.permute.xlu1 %783  ;;  %v3016_v21 = vpop.permute.xlu0 %779 }
 0x22b   :  { %1080 = vmax.xlane.f32.xlu0 %v3009_v45 }
 0x22c   :  { %1050 = vmax.xlane.f32.xlu1 %v3012_v43 }
 0x22e   :  { %v3025_v47 = vpop.permute.xlu1 %791  ;;  %v3027_v6 = vpop.permute.xlu0 %787 }
 0x22f   :  { %4044 = vst [vmem:[#allocation64_spill] sm:$0xff] %v3025_v47  ;;  %1082 = vmax.xlane.f32.xlu0 %v3023_v0  ;;  %v3046_v0 = vrot.slane %v832_v37, %v2768_v19 }
 0x231   :  { %v850_v26 = vmul.f32 %v3046_v0, %v2944_v59 }
 0x232   :  { %v3030_v20 = vpop.permute.xlu1 %799  ;;  %v3032_v49 = vpop.permute.xlu0 %795 }
 0x233   :  { %4045 = vst [vmem:[#allocation65_spill] sm:$0xff] %v3030_v20  ;;  %4046 = vst [vmem:[#allocation66_spill] sm:$0xff] %v3032_v49  ;;  %v851_v20 = vmul.f32 %v3046_v0, %v2942_v13 }
 0x236   :  { %v3036_v61 = vpop.permute.xlu1 %807  ;;  %v3038_v45 = vpop.permute.xlu0 %803 }
 0x237   :  { %4047 = vst [vmem:[#allocation67_spill] sm:$0xff] %v3036_v61  ;;  %4048 = vst [vmem:[#allocation68_spill] sm:$0xff] %v3038_v45  ;;  %v839_v45 = vrot.slane %v825_v40, %v2972_v33 }
 0x23a   :  { %v3041_v52 = vpop.permute.xlu1 %815  ;;  %v3043_v43 = vpop.permute.xlu0 %811 }
 0x23b   :  { %4049 = vst [vmem:[#allocation69_spill] sm:$0xff] %v3041_v52  ;;  %4050 = vst [vmem:[#allocation70_spill] sm:$0xff] %v3043_v43  ;;  %v3060_v52 = vrot.slane %v839_v45, %v2768_v19  ;;  %v4086_v19 = vld [vmem:[#allocation47_spill] sm:$0xff] }
 0x23d   :  { %v867_v13 = vmul.f32 %v3060_v52, %v760_v41  ;;  %v866_v59 = vmul.f32 %v3060_v52, %v756_v28 }
 0x23e   :  { %v892_v49 = vpop.permute.xlu1 %891  ;;  %v888_v61 = vpop.permute.xlu0 %887 }
 0x23f   :  { %v3053_v47 = vadd.f32 %v892_v49, %v851_v20  ;;  %v3055_v9 = vadd.f32 %v888_v61, %v850_v26  ;;  %v487_v26 = vmul.f32 %v2987_v57, %v2789_v42  ;;  %v503_v49 = vmul.f32 %v2992_v58, %v2829_v2 }
 0x241   :  { %1114 = vmax.xlane.f32.xlu0 %v3053_v47  ;;  %1112 = vmax.xlane.f32.xlu1 %v3055_v9  ;;  %v3075_v41 = vadd.f32 %v2863_v25, %v487_v26  ;;  %v3078_v28 = vadd.f32 %v2908_v27, %v503_v49  ;;  %v488_v25 = vmul.f32 %v2987_v57, %v2794_v46 }
 0x242   :  { %v900_v63 = vpop.permute.xlu1 %899  ;;  %v896_v37 = vpop.permute.xlu0 %895  ;;  %v504_v27 = vmul.f32 %v2992_v58, %v2827_v1  ;;  %v869_v46 = vmul.f32 %v3060_v52, %v2989_v18  ;;  %v854_v26 = vmul.f32 %v3046_v0, %v2954_v15 }
 0x246   :  { %v959_v43 = vpop.permute.xlu1 %958  ;;  %v955_v55 = vpop.permute.xlu0 %954 }
 0x247   :  { %v3064_v40 = vadd.f32 %v959_v43, %v867_v13  ;;  %v3066_v20 = vadd.f32 %v955_v55, %v866_v59  ;;  %v852_v55 = vmul.f32 %v3046_v0, %v2949_v31  ;;  %v868_v43 = vmul.f32 %v3060_v52, %v764_v39 }
 0x248   :  { %v3096_v31 = vadd.f32 %v2861_v24, %v488_v25  ;;  %v3099_v39 = vadd.f32 %v2906_v23, %v504_v27  ;;  %v489_v24 = vmul.f32 %v2987_v57, %v2800_v51  ;;  %v505_v23 = vmul.f32 %v2992_v58, %v2833_v5 }
 0x249   :  { %1146 = vmax.xlane.f32.xlu0 %v3064_v40  ;;  %1144 = vmax.xlane.f32.xlu1 %v3066_v20  ;;  %v3085_v42 = vadd.f32 %v896_v37, %v852_v55  ;;  %v853_v37 = vmul.f32 %v3046_v0, %v2947_v16  ;;  %v870_v51 = vmul.f32 %v3060_v52, %v3001_v32 }
 0x24a   :  { %v963_v45 = vpop.permute.xlu0 %962  ;;  %v967_v61 = vpop.permute.xlu1 %966  ;;  %v3118_v18 = vadd.f32 %v2867_v30, %v489_v24  ;;  %v3121_v16 = vadd.f32 %v2914_v4, %v505_v23  ;;  %v490_v4 = vmul.f32 %v2987_v57, %v2798_v50  ;;  %v506_v30 = vmul.f32 %v2992_v58, %v2831_v3 }
 0x24b   :  { %v3087_v2 = vadd.f32 %v963_v45, %v868_v43  ;;  %v3107_v1 = vadd.f32 %v900_v63, %v853_v37  ;;  %v3109_v13 = vadd.f32 %v967_v61, %v869_v46  ;;  %v855_v43 = vmul.f32 %v3046_v0, %v2952_v62 }
 0x24c   :  { %v3140_v32 = vadd.f32 %v2865_v29, %v490_v4  ;;  %v3143_v15 = vadd.f32 %v2912_v17, %v506_v30  ;;  %v871_v50 = vmul.f32 %v3060_v52, %v2999_v60  ;;  %v491_v17 = vmul.f32 %v2987_v57, %v2805_v54 }
 0x24d   :  { %1084 = vmax.xlane.f32.xlu0 %v3078_v28  ;;  %1052 = vmax.xlane.f32.xlu1 %v3075_v41  ;;  %v507_v29 = vmul.f32 %v2992_v58, %v2838_v8  ;;  %v856_v37 = vmul.f32 %v3046_v0, %v2959_v44  ;;  %v872_v54 = vmul.f32 %v3060_v52, %v3016_v21 }
 0x24e   :  { %v971_v63 = vpop.permute.xlu1 %970  ;;  %v904_v59 = vpop.permute.xlu0 %903  ;;  %v3162_v62 = vadd.f32 %v2874_v36, %v491_v17  ;;  %v492_v36 = vmul.f32 %v2987_v57, %v2803_v53  ;;  %v873_v53 = vmul.f32 %v3060_v52, %v3014_v12  ;;  %v858_v4 = vmul.f32 %v3046_v0, %v2963_v11  ;;  %v4053_v11 = vld [vmem:[#allocation37_spill] sm:$0xff] }
 0x24f   :  { %v3129_v5 = vadd.f32 %v971_v63, %v870_v51  ;;  %v3131_v49 = vadd.f32 %v904_v59, %v854_v26  ;;  %v3165_v60 = vadd.f32 %v2919_v48, %v507_v29  ;;  %v508_v48 = vmul.f32 %v2992_v58, %v2836_v7 }
 0x250   :  { %v3184_v44 = vadd.f32 %v2872_v35, %v492_v36  ;;  %v857_v63 = vmul.f32 %v3046_v0, %v2957_v14  ;;  %v509_v35 = vmul.f32 %v2992_v58, %v2842_v10 }
 0x251   :  { %1116 = vmax.xlane.f32.xlu1 %v3085_v42  ;;  %1148 = vmax.xlane.f32.xlu0 %v3087_v2  ;;  %v3187_v21 = vadd.f32 %v2917_v34, %v508_v48  ;;  %v493_v34 = vmul.f32 %v2987_v57, %v2809_v56  ;;  %v874_v56 = vmul.f32 %v3060_v52, %v3027_v6 }
 0x252   :  { %v975_v45 = vpop.permute.xlu1 %974  ;;  %v908_v55 = vpop.permute.xlu0 %907  ;;  %v3209_v12 = vadd.f32 %v2924_v22, %v509_v35 }
 0x253   :  { %v3151_v3 = vadd.f32 %v975_v45, %v871_v50  ;;  %v3153_v25 = vadd.f32 %v908_v55, %v855_v43  ;;  %v3206_v14 = vadd.f32 %v2880_v38, %v493_v34  ;;  %v4051_v38 = vld [vmem:[#allocation23_spill] sm:$0xff]  ;;  %v4052_v45 = vld [vmem:[#allocation30_spill] sm:$0xff]  ;;  %v4054_v43 = vld [vmem:[#allocation44_spill] sm:$0xff] }
 0x254   :  { %v494_v22 = vmul.f32 %v2987_v57, %v4051_v38  ;;  %v510_v55 = vmul.f32 %v2992_v58, %v4052_v45  ;;  %v4059_v34 = vld [vmem:[#allocation39_spill] sm:$0xff]  ;;  %v4061_v38 = vld [vmem:[#allocation53_spill] sm:$0xff]  ;;  %v4062_v45 = vld [vmem:[#allocation66_spill] sm:$0xff] }
 0x255   :  { %1054 = vmax.xlane.f32.xlu1 %v3096_v31  ;;  %1086 = vmax.xlane.f32.xlu0 %v3099_v39 }
 0x256   :  { %v979_v27 = vpop.permute.xlu1 %978  ;;  %v912_v61 = vpop.permute.xlu0 %911  ;;  %v3228_v6 = vadd.f32 %v4053_v11, %v494_v22  ;;  %v3231_v50 = vadd.f32 %v4054_v43, %v510_v55  ;;  %v860_v22 = vmul.f32 %v3046_v0, %v4061_v38  ;;  %v876_v55 = vmul.f32 %v3060_v52, %v4062_v45  ;;  %v4072_v45 = vld [vmem:[#allocation27_spill] sm:$0xff] }
 0x257   :  { %v3173_v8 = vadd.f32 %v979_v27, %v872_v54  ;;  %v3175_v46 = vadd.f32 %v912_v61, %v856_v37  ;;  %v4055_v27 = vld [vmem:[#allocation51_spill] sm:$0xff]  ;;  %v4056_v37 = vld [vmem:[#allocation64_spill] sm:$0xff] }
 0x258   :  { %v859_v61 = vmul.f32 %v3046_v0, %v4055_v27  ;;  %v875_v54 = vmul.f32 %v3060_v52, %v4056_v37  ;;  %v4064_v27 = vld [vmem:[#allocation31_spill] sm:$0xff]  ;;  %v4065_v37 = vld [vmem:[#allocation38_spill] sm:$0xff] }
 0x259   :  { %1118 = vmax.xlane.f32.xlu1 %v3107_v1  ;;  %1150 = vmax.xlane.f32.xlu0 %v3109_v13 }
 0x25a   :  { %v983_v24 = vpop.permute.xlu1 %982  ;;  %v916_v23 = vpop.permute.xlu0 %915 }
 0x25b   :  { %v3195_v7 = vadd.f32 %v983_v24, %v873_v53  ;;  %v3197_v59 = vadd.f32 %v916_v23, %v857_v63  ;;  %v4057_v24 = vld [vmem:[#allocation25_spill] sm:$0xff]  ;;  %v4058_v63 = vld [vmem:[#allocation32_spill] sm:$0xff] }
 0x25c   :  { %v495_v23 = vmul.f32 %v2987_v57, %v4057_v24  ;;  %v511_v53 = vmul.f32 %v2992_v58, %v4058_v63  ;;  %v4066_v24 = vld [vmem:[#allocation45_spill] sm:$0xff] }
 0x25d   :  { %1056 = vmax.xlane.f32.xlu1 %v3118_v18  ;;  %1088 = vmax.xlane.f32.xlu0 %v3121_v16 }
 0x25e   :  { %v987_v26 = vpop.permute.xlu1 %986  ;;  %v920_v51 = vpop.permute.xlu0 %919  ;;  %v3250_v35 = vadd.f32 %v4059_v34, %v495_v23  ;;  %v4068_v34 = vld [vmem:[#allocation52_spill] sm:$0xff] }
 0x25f   :  { %v3217_v10 = vadd.f32 %v987_v26, %v874_v56  ;;  %v3219_v30 = vadd.f32 %v920_v51, %v858_v4  ;;  %v4060_v26 = vld [vmem:[#allocation46_spill] sm:$0xff] }
 0x260   :  { %v3253_v51 = vadd.f32 %v4060_v26, %v511_v53  ;;  %v861_v26 = vmul.f32 %v3046_v0, %v4068_v34 }
 0x261   :  { %1152 = vmax.xlane.f32.xlu0 %v3129_v5  ;;  %1120 = vmax.xlane.f32.xlu1 %v3131_v49 }
 0x262   :  { %v991_v17 = vpop.permute.xlu1 %990  ;;  %v924_v29 = vpop.permute.xlu0 %923 }
 0x263   :  { %v3239_v36 = vadd.f32 %v991_v17, %v875_v54  ;;  %v3241_v48 = vadd.f32 %v924_v29, %v859_v61  ;;  %v4063_v17 = vld [vmem:[#allocation24_spill] sm:$0xff]  ;;  %v512_v61 = vmul.f32 %v2992_v58, %v4064_v27  ;;  %v4074_v27 = vld [vmem:[#allocation41_spill] sm:$0xff] }
 0x264   :  { %v496_v29 = vmul.f32 %v2987_v57, %v4063_v17  ;;  %v4073_v17 = vld [vmem:[#allocation34_spill] sm:$0xff] }
 0x265   :  { %1090 = vmax.xlane.f32.xlu0 %v3143_v15  ;;  %1058 = vmax.xlane.f32.xlu1 %v3140_v32  ;;  %v3275_v23 = vadd.f32 %v4066_v24, %v512_v61 }
 0x266   :  { %v995_v4 = vpop.permute.xlu1 %994  ;;  %v928_v56 = vpop.permute.xlu0 %927  ;;  %v3272_v54 = vadd.f32 %v4065_v37, %v496_v29  ;;  %v513_v29 = vmul.f32 %v2992_v58, %v4073_v17  ;;  %v4076_v37 = vld [vmem:[#allocation48_spill] sm:$0xff] }
 0x267   :  { %v3261_v11 = vadd.f32 %v995_v4, %v876_v55  ;;  %v3263_v43 = vadd.f32 %v928_v56, %v860_v22  ;;  %4067 = vst [vmem:[#allocation23_spill] sm:$0xff] %v3275_v23  ;;  %v4069_v4 = vld [vmem:[#allocation65_spill] sm:$0xff]  ;;  %v497_v55 = vmul.f32 %v2987_v57, %v4072_v45 }
 0x268   :  { %v877_v56 = vmul.f32 %v3060_v52, %v4069_v4  ;;  %v3297_v24 = vadd.f32 %v4076_v37, %v513_v29  ;;  %v4079_v4 = vld [vmem:[#allocation68_spill] sm:$0xff] }
 0x269   :  { %1154 = vmax.xlane.f32.xlu0 %v3151_v3  ;;  %1122 = vmax.xlane.f32.xlu1 %v3153_v25  ;;  %v3294_v61 = vadd.f32 %v4074_v27, %v497_v55  ;;  %v4082_v55 = vld [vmem:[#allocation26_spill] sm:$0xff]  ;;  %v4083_v27 = vld [vmem:[#allocation33_spill] sm:$0xff] }
 0x26a   :  { %v999_v63 = vpop.permute.xlu1 %998  ;;  %v932_v53 = vpop.permute.xlu0 %931  ;;  %4077 = vst [vmem:[#allocation51_spill] sm:$0xff] %v3297_v24  ;;  %v498_v29 = vmul.f32 %v2987_v57, %v4082_v55  ;;  %v514_v37 = vmul.f32 %v2992_v58, %v4083_v27 }
 0x26b   :  { %v3283_v38 = vadd.f32 %v999_v63, %v877_v56  ;;  %v3285_v22 = vadd.f32 %v932_v53, %v861_v26  ;;  %4075 = vst [vmem:[#allocation44_spill] sm:$0xff] %v3294_v61  ;;  %v4078_v53 = vld [vmem:[#allocation57_spill] sm:$0xff]  ;;  %v878_v56 = vmul.f32 %v3060_v52, %v4079_v4 }
 0x26c   :  { %v862_v26 = vmul.f32 %v3046_v0, %v4078_v53  ;;  %v4084_v53 = vld [vmem:[#allocation40_spill] sm:$0xff]  ;;  %v3319_v33 = vadd.f32 %v4086_v19, %v514_v37 }
 0x26d   :  { %1092 = vmax.xlane.f32.xlu0 %v3165_v60  ;;  %1060 = vmax.xlane.f32.xlu1 %v3162_v62  ;;  %4070 = vst [vmem:[#allocation30_spill] sm:$0xff] %v3283_v38  ;;  %4071 = vst [vmem:[#allocation37_spill] sm:$0xff] %v3285_v22  ;;  %v3316_v4 = vadd.f32 %v4084_v53, %v498_v29  ;;  %v4092_v29 = vld [vmem:[#allocation29_spill] sm:$0xff]  ;;  %v4093_v37 = vld [vmem:[#allocation36_spill] sm:$0xff] }
 0x26e   :  { %v1003_v63 = vpop.permute.xlu1 %1002  ;;  %v936_v34 = vpop.permute.xlu0 %935  ;;  %4087 = vst [vmem:[#allocation39_spill] sm:$0xff] %v3319_v33  ;;  %v499_v19 = vmul.f32 %v2987_v57, %v4092_v29  ;;  %v515_v53 = vmul.f32 %v2992_v58, %v4093_v37 }
 0x26f   :  { %v3305_v45 = vadd.f32 %v1003_v63, %v878_v56  ;;  %v3307_v17 = vadd.f32 %v936_v34, %v862_v26  ;;  %4085 = vst [vmem:[#allocation32_spill] sm:$0xff] %v3316_v4  ;;  %v4088_v34 = vld [vmem:[#allocation56_spill] sm:$0xff] }
 0x270   :  { %v863_v26 = vmul.f32 %v3046_v0, %v4088_v34  ;;  %v4094_v34 = vld [vmem:[#allocation43_spill] sm:$0xff] }
 0x271   :  { %1156 = vmax.xlane.f32.xlu0 %v3173_v8  ;;  %1124 = vmax.xlane.f32.xlu1 %v3175_v46  ;;  %4080 = vst [vmem:[#allocation64_spill] sm:$0xff] %v3305_v45  ;;  %4081 = vst [vmem:[#allocation25_spill] sm:$0xff] %v3307_v17 }
 0x272   :  { %v1007_v63 = vpop.permute.xlu1 %1006  ;;  %v940_v56 = vpop.permute.xlu0 %939 }
 0x275   :  { %1094 = vmax.xlane.f32.xlu0 %v3187_v21  ;;  %1062 = vmax.xlane.f32.xlu1 %v3184_v44 }
 0x279   :  { %1158 = vmax.xlane.f32.xlu0 %v3195_v7  ;;  %1126 = vmax.xlane.f32.xlu1 %v3197_v59 }
 0x27d   :  { %1096 = vmax.xlane.f32.xlu0 %v3209_v12  ;;  %1064 = vmax.xlane.f32.xlu1 %v3206_v14 }
 0x281   :  { %1160 = vmax.xlane.f32.xlu0 %v3217_v10  ;;  %1128 = vmax.xlane.f32.xlu1 %v3219_v30 }
 0x285   :  { %1098 = vmax.xlane.f32.xlu0 %v3231_v50  ;;  %1066 = vmax.xlane.f32.xlu1 %v3228_v6 }
 0x289   :  { %1162 = vmax.xlane.f32.xlu0 %v3239_v36  ;;  %1130 = vmax.xlane.f32.xlu1 %v3241_v48 }
 0x28d   :  { %1100 = vmax.xlane.f32.xlu0 %v3253_v51  ;;  %1068 = vmax.xlane.f32.xlu1 %v3250_v35 }
 0x291   :  { %1164 = vmax.xlane.f32.xlu0 %v3261_v11  ;;  %1132 = vmax.xlane.f32.xlu1 %v3263_v43 }
 0x295   :  { %1102 = vmax.xlane.f32.xlu0 %v3275_v23  ;;  %1070 = vmax.xlane.f32.xlu1 %v3272_v54 }
 0x299   :  { %1166 = vmax.xlane.f32.xlu0 %v3283_v38  ;;  %1134 = vmax.xlane.f32.xlu1 %v3285_v22  ;;  %v4115_v22 = vld [vmem:[#allocation63_spill] sm:$0xff] }
 0x29d   :  { %1104 = vmax.xlane.f32.xlu0 %v3297_v24  ;;  %1072 = vmax.xlane.f32.xlu1 %v3294_v61  ;;  %v4089_v24 = vld [vmem:[#allocation67_spill] sm:$0xff]  ;;  %v4114_v61 = vld [vmem:[#allocation61_spill] sm:$0xff] }
 0x29e   :  { %v879_v55 = vmul.f32 %v3060_v52, %v4089_v24  ;;  %v3338_v24 = vadd.f32 %v4094_v34, %v499_v19  ;;  %v4102_v19 = vld [vmem:[#allocation28_spill] sm:$0xff] }
 0x2a0   :  { %v3327_v27 = vadd.f32 %v1007_v63, %v879_v55  ;;  %4095 = vst [vmem:[#allocation66_spill] sm:$0xff] %v3338_v24  ;;  %v1011_v63 = vpop.permute.xlu1 %1010  ;;  %v944_v55 = vpop.permute.xlu0 %943 }
 0x2a1   :  { %1168 = vmax.xlane.f32.xlu0 %v3305_v45  ;;  %1136 = vmax.xlane.f32.xlu1 %v3307_v17  ;;  %v3329_v45 = vadd.f32 %v940_v56, %v863_v26  ;;  %v4098_v56 = vld [vmem:[#allocation59_spill] sm:$0xff] }
 0x2a2   :  { %4090 = vst [vmem:[#allocation46_spill] sm:$0xff] %v3327_v27  ;;  %v864_v26 = vmul.f32 %v3046_v0, %v4098_v56  ;;  %v4104_v56 = vld [vmem:[#allocation42_spill] sm:$0xff] }
 0x2a3   :  { %4091 = vst [vmem:[#allocation53_spill] sm:$0xff] %v3329_v45 }
 0x2a5   :  { %1106 = vmax.xlane.f32.xlu0 %v3319_v33  ;;  %1074 = vmax.xlane.f32.xlu1 %v3316_v4  ;;  %v4096_v33 = vld [vmem:[#allocation50_spill] sm:$0xff] }
 0x2a6   :  { %v3341_v17 = vadd.f32 %v4096_v33, %v515_v53  ;;  %v4099_v4 = vld [vmem:[#allocation70_spill] sm:$0xff]  ;;  %v500_v33 = vmul.f32 %v2987_v57, %v4102_v19  ;;  %v4103_v53 = vld [vmem:[#allocation35_spill] sm:$0xff] }
 0x2a7   :  { %v880_v29 = vmul.f32 %v3060_v52, %v4099_v4  ;;  %v516_v34 = vmul.f32 %v2992_v58, %v4103_v53 }
 0x2a8   :  { %4097 = vst [vmem:[#allocation24_spill] sm:$0xff] %v3341_v17  ;;  %v3360_v4 = vadd.f32 %v4104_v56, %v500_v33 }
 0x2a9   :  { %1170 = vmax.xlane.f32.xlu0 %v3327_v27  ;;  %1138 = vmax.xlane.f32.xlu1 %v3329_v45  ;;  %v3349_v37 = vadd.f32 %v1011_v63, %v880_v29  ;;  %v3351_v27 = vadd.f32 %v944_v55, %v864_v26  ;;  %v1015_v63 = vpop.permute.xlu1 %1014  ;;  %v948_v29 = vpop.permute.xlu0 %947  ;;  %v4108_v55 = vld [vmem:[#allocation58_spill] sm:$0xff] }
 0x2aa   :  { %4105 = vst [vmem:[#allocation45_spill] sm:$0xff] %v3360_v4  ;;  %v865_v26 = vmul.f32 %v3046_v0, %v4108_v55 }
 0x2ab   :  { %4100 = vst [vmem:[#allocation31_spill] sm:$0xff] %v3349_v37  ;;  %4101 = vst [vmem:[#allocation38_spill] sm:$0xff] %v3351_v27 }
 0x2ac   :  { %v3373_v19 = vadd.f32 %v948_v29, %v865_v26 }
 0x2ad   :  { %1108 = vmax.xlane.f32.xlu0 %v3341_v17  ;;  %1076 = vmax.xlane.f32.xlu1 %v3338_v24  ;;  %v4106_v17 = vld [vmem:[#allocation49_spill] sm:$0xff] }
 0x2ae   :  { %v3363_v45 = vadd.f32 %v4106_v17, %v516_v34  ;;  %v4109_v24 = vld [vmem:[#allocation69_spill] sm:$0xff]  ;;  %4111 = vst [vmem:[#allocation27_spill] sm:$0xff] %v3373_v19 }
 0x2af   :  { %v881_v57 = vmul.f32 %v3060_v52, %v4109_v24  ;;  %v4112_v24 = vld [vmem:[#allocation60_spill] sm:$0xff] }
 0x2b0   :  { %4107 = vst [vmem:[#allocation52_spill] sm:$0xff] %v3363_v45  ;;  %v1049_v17 = vpop.xlane.xlu0 %1048 }
 0x2b1   :  { %1172 = vmax.xlane.f32.xlu0 %v3349_v37  ;;  %1140 = vmax.xlane.f32.xlu1 %v3351_v27  ;;  %v3371_v58 = vadd.f32 %v1015_v63, %v881_v57  ;;  %v4113_v37 = vld [vmem:[#allocation62_spill] sm:$0xff] }
 0x2b3   :  { %4110 = vst [vmem:[#allocation65_spill] sm:$0xff] %v3371_v58 }
 0x2b4   :  { %v1081_v33 = vpop.xlane.xlu0 %1080 }
 0x2b5   :  { %1110 = vmax.xlane.f32.xlu0 %v3363_v45  ;;  %1078 = vmax.xlane.f32.xlu1 %v3360_v4  ;;  %v1051_v53 = vpop.xlane.xlu1 %1050 }
 0x2b8   :  { %v1083_v34 = vpop.xlane.xlu0 %1082 }
 0x2b9   :  { %1174 = vmax.xlane.f32.xlu0 %v3371_v58  ;;  %1142 = vmax.xlane.f32.xlu1 %v3373_v19 }
 0x2ca   :  { %v1113_v0 = vpop.xlane.xlu1 %1112  ;;  %v1115_v56 = vpop.xlane.xlu0 %1114 }
 0x2cb   :  { %v1176_v55 = vmax.f32 %v1049_v17, %v1113_v0  ;;  %v1177_v52 = vmax.f32 %v1051_v53, %v1115_v56 }
 0x2cd   :  { %v1208_v45 = vsub.f32 %v4112_v24, %v1176_v55  ;;  %v1209_v4 = vsub.f32 %v4113_v37, %v1177_v52  ;;  %v1304_v27 = vsub.f32 %v3055_v9, %v1176_v55  ;;  %v1305_v0 = vsub.f32 %v3053_v47, %v1177_v52 }
 0x2cf   :  { %v1240_v63 = vmul.f32 1.442695, %v1208_v45  ;;  %v1242_v57 = vmul.f32 1.442695, %v1209_v4  ;;  %v1336_v45 = vmul.f32 1.442695, %v1304_v27 }
 0x2d1   :  { %2364 = vpow2.f32 %v1240_v63  ;;  %v1338_v63 = vmul.f32 1.442695, %v1305_v0 }
 0x2d2   :  { %v1145_v29 = vpop.xlane.xlu1 %1144  ;;  %v1147_v26 = vpop.xlane.xlu0 %1146  ;;  %2366 = vpow2.f32 %v1242_v57 }
 0x2d3   :  { %v1192_v58 = vmax.f32 %v1081_v33, %v1145_v29  ;;  %v1193_v19 = vmax.f32 %v1083_v34, %v1147_v26 }
 0x2d5   :  { %v1224_v38 = vsub.f32 %v4114_v61, %v1192_v58  ;;  %v1225_v23 = vsub.f32 %v4115_v22, %v1193_v19  ;;  %v1320_v4 = vsub.f32 %v3066_v20, %v1192_v58  ;;  %v1321_v24 = vsub.f32 %v3064_v40, %v1193_v19 }
 0x2d6   :  { %v1053_v17 = vpop.xlane.xlu1 %1052  ;;  %v1085_v53 = vpop.xlane.xlu0 %1084 }
 0x2d7   :  { %v1272_v56 = vmul.f32 1.442695, %v1224_v38  ;;  %v1274_v37 = vmul.f32 1.442695, %v1225_v23  ;;  %v1368_v22 = vmul.f32 1.442695, %v1320_v4 }
 0x2d8   :  { %v1370_v47 = vmul.f32 1.442695, %v1321_v24 }
 0x2d9   :  { %2368 = vpow2.f32 %v1272_v56 }
 0x2da   :  { %v1117_v33 = vpop.xlane.xlu1 %1116  ;;  %v1149_v34 = vpop.xlane.xlu0 %1148  ;;  %2370 = vpow2.f32 %v1274_v37 }
 0x2db   :  { %v1178_v9 = vmax.f32 %v1053_v17, %v1117_v33  ;;  %v1194_v61 = vmax.f32 %v1085_v53, %v1149_v34  ;;  %2372 = vpow2.f32 %v1336_v45 }
 0x2dc   :  { %2374 = vpow2.f32 %v1338_v63 }
 0x2dd   :  { %v1210_v55 = vsub.f32 %v3075_v41, %v1178_v9  ;;  %v1226_v20 = vsub.f32 %v3078_v28, %v1194_v61  ;;  %2376 = vpow2.f32 %v1368_v22  ;;  %v1306_v58 = vsub.f32 %v3085_v42, %v1178_v9 }
 0x2de   :  { %v3386_v57 = vpop.eup %2364  ;;  %v1055_v23 = vpop.xlane.xlu1 %1054  ;;  %2378 = vpow2.f32 %v1370_v47  ;;  %v1322_v29 = vsub.f32 %v3087_v2, %v1194_v61 }
 0x2df   :  { %v1087_v38 = vpop.xlane.xlu0 %1086  ;;  %1408 = vadd.xlane.f32.xlu1 %v3386_v57  ;;  %v3390_v40 = vpop.eup %2366  ;;  %v1244_v27 = vmul.f32 1.442695, %v1210_v55  ;;  %v1276_v52 = vmul.f32 1.442695, %v1226_v20  ;;  %v1340_v28 = vmul.f32 1.442695, %v1306_v58 }
 0x2e0   :  { %1410 = vadd.xlane.f32.xlu0 %v3390_v40  ;;  %v1372_v42 = vmul.f32 1.442695, %v1322_v29 }
 0x2e1   :  { %2380 = vpow2.f32 %v1244_v27 }
 0x2e2   :  { %v1119_v41 = vpop.xlane.xlu1 %1118  ;;  %2382 = vpow2.f32 %v1276_v52 }
 0x2e3   :  { %v1151_v19 = vpop.xlane.xlu0 %1150  ;;  %v1179_v26 = vmax.f32 %v1055_v23, %v1119_v41  ;;  %2384 = vpow2.f32 %v1340_v28 }
 0x2e4   :  { %v1195_v17 = vmax.f32 %v1087_v38, %v1151_v19  ;;  %2386 = vpow2.f32 %v1372_v42 }
 0x2e5   :  { %v1211_v53 = vsub.f32 %v3096_v31, %v1179_v26  ;;  %v1307_v24 = vsub.f32 %v3107_v1, %v1179_v26 }
 0x2e6   :  { %v3396_v0 = vpop.eup %2368  ;;  %v1057_v56 = vpop.xlane.xlu1 %1056  ;;  %v1227_v45 = vsub.f32 %v3099_v39, %v1195_v17  ;;  %v1323_v31 = vsub.f32 %v3109_v13, %v1195_v17 }
 0x2e7   :  { %v1089_v37 = vpop.xlane.xlu0 %1088  ;;  %1440 = vadd.xlane.f32.xlu1 %v3396_v0  ;;  %v3400_v4 = vpop.eup %2370  ;;  %v1246_v2 = vmul.f32 1.442695, %v1211_v53  ;;  %v1342_v55 = vmul.f32 1.442695, %v1307_v24 }
 0x2e8   :  { %1442 = vadd.xlane.f32.xlu0 %v3400_v4  ;;  %v3404_v33 = vpop.eup %2372  ;;  %v1278_v9 = vmul.f32 1.442695, %v1227_v45  ;;  %v1374_v23 = vmul.f32 1.442695, %v1323_v31 }
 0x2e9   :  { %v3408_v22 = vpop.eup %2374  ;;  %2388 = vpow2.f32 %v1246_v2 }
 0x2ea   :  { %v1121_v34 = vpop.xlane.xlu1 %1120  ;;  %v3412_v47 = vpop.eup %2376  ;;  %2390 = vpow2.f32 %v1278_v9 }
 0x2eb   :  { %v1153_v63 = vpop.xlane.xlu0 %1152  ;;  %v1180_v61 = vmax.f32 %v1057_v56, %v1121_v34  ;;  %1472 = vadd.xlane.f32.xlu1 %v3404_v33  ;;  %v3414_v20 = vpop.eup %2378  ;;  %2392 = vpow2.f32 %v1342_v55 }
 0x2ec   :  { %v1196_v39 = vmax.f32 %v1089_v37, %v1153_v63  ;;  %1474 = vadd.xlane.f32.xlu0 %v3408_v22  ;;  %2394 = vpow2.f32 %v1374_v23 }
 0x2ed   :  { %v1212_v1 = vsub.f32 %v3118_v18, %v1180_v61  ;;  %v1308_v41 = vsub.f32 %v3131_v49, %v1180_v61 }
 0x2ee   :  { %v1059_v13 = vpop.xlane.xlu1 %1058  ;;  %v1228_v27 = vsub.f32 %v3121_v16, %v1196_v39  ;;  %v3420_v18 = vpop.eup %2380  ;;  %v1324_v26 = vsub.f32 %v3129_v5, %v1196_v39 }
 0x2ef   :  { %v1091_v38 = vpop.xlane.xlu0 %1090  ;;  %1504 = vadd.xlane.f32.xlu1 %v3412_v47  ;;  %v1248_v58 = vmul.f32 1.442695, %v1212_v1  ;;  %v3424_v16 = vpop.eup %2382  ;;  %v1344_v53 = vmul.f32 1.442695, %v1308_v41 }
 0x2f0   :  { %1506 = vadd.xlane.f32.xlu0 %v3414_v20  ;;  %v1280_v29 = vmul.f32 1.442695, %v1228_v27  ;;  %v3428_v56 = vpop.eup %2384  ;;  %v1376_v45 = vmul.f32 1.442695, %v1324_v26 }
 0x2f1   :  { %2396 = vpow2.f32 %v1248_v58  ;;  %v3432_v2 = vpop.eup %2386 }
 0x2f2   :  { %v1123_v19 = vpop.xlane.xlu1 %1122  ;;  %2398 = vpow2.f32 %v1280_v29 }
 0x2f3   :  { %v1155_v52 = vpop.xlane.xlu0 %1154  ;;  %v1181_v17 = vmax.f32 %v1059_v13, %v1123_v19  ;;  %1412 = vadd.xlane.f32.xlu1 %v3420_v18  ;;  %2400 = vpow2.f32 %v1344_v53 }
 0x2f4   :  { %v1197_v28 = vmax.f32 %v1091_v38, %v1155_v52  ;;  %1444 = vadd.xlane.f32.xlu0 %v3424_v16  ;;  %2402 = vpow2.f32 %v1376_v45 }
 0x2f5   :  { %v1213_v49 = vsub.f32 %v3140_v32, %v1181_v17  ;;  %v1309_v31 = vsub.f32 %v3153_v25, %v1181_v17 }
 0x2f6   :  { %v1061_v37 = vpop.xlane.xlu1 %1060  ;;  %v1229_v5 = vsub.f32 %v3143_v15, %v1197_v28  ;;  %v3436_v32 = vpop.eup %2388  ;;  %v1325_v34 = vsub.f32 %v3151_v3, %v1197_v28 }
 0x2f7   :  { %v1093_v42 = vpop.xlane.xlu0 %1092  ;;  %1476 = vadd.xlane.f32.xlu1 %v3428_v56  ;;  %v1250_v24 = vmul.f32 1.442695, %v1213_v49  ;;  %v3440_v55 = vpop.eup %2390  ;;  %v1346_v1 = vmul.f32 1.442695, %v1309_v31 }
 0x2f8   :  { %1508 = vadd.xlane.f32.xlu0 %v3432_v2  ;;  %v1282_v61 = vmul.f32 1.442695, %v1229_v5  ;;  %v3444_v23 = vpop.eup %2392  ;;  %v1378_v13 = vmul.f32 1.442695, %v1325_v34 }
 0x2f9   :  { %2404 = vpow2.f32 %v1250_v24  ;;  %v3446_v27 = vpop.eup %2394 }
 0x2fa   :  { %v1125_v63 = vpop.xlane.xlu1 %1124  ;;  %2406 = vpow2.f32 %v1282_v61 }
 0x2fb   :  { %v1157_v9 = vpop.xlane.xlu0 %1156  ;;  %v1182_v39 = vmax.f32 %v1061_v37, %v1125_v63  ;;  %1414 = vadd.xlane.f32.xlu1 %v3436_v32  ;;  %2408 = vpow2.f32 %v1346_v1 }
 0x2fc   :  { %v1198_v15 = vmax.f32 %v1093_v42, %v1157_v9  ;;  %1446 = vadd.xlane.f32.xlu0 %v3440_v55  ;;  %2410 = vpow2.f32 %v1378_v13 }
 0x2fd   :  { %v1214_v25 = vsub.f32 %v3162_v62, %v1182_v39  ;;  %v1310_v19 = vsub.f32 %v3175_v46, %v1182_v39 }
 0x2fe   :  { %v1063_v3 = vpop.xlane.xlu1 %1062  ;;  %v1230_v58 = vsub.f32 %v3165_v60, %v1198_v15  ;;  %v3452_v62 = vpop.eup %2396  ;;  %v1326_v17 = vsub.f32 %v3173_v8, %v1198_v15 }
 0x2ff   :  { %v1095_v38 = vpop.xlane.xlu0 %1094  ;;  %1478 = vadd.xlane.f32.xlu1 %v3444_v23  ;;  %v1252_v41 = vmul.f32 1.442695, %v1214_v25  ;;  %v3456_v60 = vpop.eup %2398  ;;  %v1348_v49 = vmul.f32 1.442695, %v1310_v19 }
 0x300   :  { %1510 = vadd.xlane.f32.xlu0 %v3446_v27  ;;  %v1284_v26 = vmul.f32 1.442695, %v1230_v58  ;;  %v3460_v37 = vpop.eup %2400  ;;  %v1380_v5 = vmul.f32 1.442695, %v1326_v17 }
 0x301   :  { %2412 = vpow2.f32 %v1252_v41  ;;  %v3464_v24 = vpop.eup %2402 }
 0x302   :  { %v1127_v52 = vpop.xlane.xlu1 %1126  ;;  %2414 = vpow2.f32 %v1284_v26 }
 0x303   :  { %v1159_v29 = vpop.xlane.xlu0 %1158  ;;  %v1183_v28 = vmax.f32 %v1063_v3, %v1127_v52  ;;  %1416 = vadd.xlane.f32.xlu1 %v3452_v62  ;;  %2416 = vpow2.f32 %v1348_v49 }
 0x304   :  { %v1199_v53 = vmax.f32 %v1095_v38, %v1159_v29  ;;  %1448 = vadd.xlane.f32.xlu0 %v3456_v60  ;;  %2418 = vpow2.f32 %v1380_v5 }
 0x305   :  { %v1215_v46 = vsub.f32 %v3184_v44, %v1183_v28  ;;  %v1311_v34 = vsub.f32 %v3197_v59, %v1183_v28 }
 0x306   :  { %v1065_v42 = vpop.xlane.xlu1 %1064  ;;  %v1231_v8 = vsub.f32 %v3187_v21, %v1199_v53  ;;  %v3468_v44 = vpop.eup %2404  ;;  %v1327_v63 = vsub.f32 %v3195_v7, %v1199_v53 }
 0x307   :  { %v1097_v45 = vpop.xlane.xlu0 %1096  ;;  %1480 = vadd.xlane.f32.xlu1 %v3460_v37  ;;  %v1254_v31 = vmul.f32 1.442695, %v1215_v46  ;;  %v3472_v1 = vpop.eup %2406  ;;  %v1350_v25 = vmul.f32 1.442695, %v1311_v34 }
 0x308   :  { %1512 = vadd.xlane.f32.xlu0 %v3464_v24  ;;  %v1286_v39 = vmul.f32 1.442695, %v1231_v8  ;;  %v3476_v13 = vpop.eup %2408  ;;  %v1382_v3 = vmul.f32 1.442695, %v1327_v63 }
 0x309   :  { %2420 = vpow2.f32 %v1254_v31  ;;  %v3478_v58 = vpop.eup %2410 }
 0x30a   :  { %v1129_v9 = vpop.xlane.xlu1 %1128  ;;  %2422 = vpow2.f32 %v1286_v39 }
 0x30b   :  { %v1161_v61 = vpop.xlane.xlu0 %1160  ;;  %v1184_v15 = vmax.f32 %v1065_v42, %v1129_v9  ;;  %1418 = vadd.xlane.f32.xlu1 %v3468_v44  ;;  %2424 = vpow2.f32 %v1350_v25 }
 0x30c   :  { %v1200_v21 = vmax.f32 %v1097_v45, %v1161_v61  ;;  %1450 = vadd.xlane.f32.xlu0 %v3472_v1  ;;  %2426 = vpow2.f32 %v1382_v3 }
 0x30d   :  { %v1216_v59 = vsub.f32 %v3206_v14, %v1184_v15  ;;  %v1312_v52 = vsub.f32 %v3219_v30, %v1184_v15 }
 0x30e   :  { %v1067_v7 = vpop.xlane.xlu1 %1066  ;;  %v1232_v41 = vsub.f32 %v3209_v12, %v1200_v21  ;;  %v3484_v14 = vpop.eup %2412  ;;  %v1328_v28 = vsub.f32 %v3217_v10, %v1200_v21 }
 0x30f   :  { %v1099_v38 = vpop.xlane.xlu0 %1098  ;;  %1482 = vadd.xlane.f32.xlu1 %v3476_v13  ;;  %v1256_v19 = vmul.f32 1.442695, %v1216_v59  ;;  %v3488_v12 = vpop.eup %2414  ;;  %v1352_v46 = vmul.f32 1.442695, %v1312_v52 }
 0x310   :  { %1514 = vadd.xlane.f32.xlu0 %v3478_v58  ;;  %v1288_v17 = vmul.f32 1.442695, %v1232_v41  ;;  %v3492_v42 = vpop.eup %2416  ;;  %v1384_v8 = vmul.f32 1.442695, %v1328_v28 }
 0x311   :  { %2428 = vpow2.f32 %v1256_v19  ;;  %v3496_v31 = vpop.eup %2418 }
 0x312   :  { %v1131_v29 = vpop.xlane.xlu1 %1130  ;;  %2430 = vpow2.f32 %v1288_v17 }
 0x313   :  { %v1163_v26 = vpop.xlane.xlu0 %1162  ;;  %v1185_v53 = vmax.f32 %v1067_v7, %v1131_v29  ;;  %1420 = vadd.xlane.f32.xlu1 %v3484_v14  ;;  %2432 = vpow2.f32 %v1352_v46 }
 0x314   :  { %v1201_v49 = vmax.f32 %v1099_v38, %v1163_v26  ;;  %1452 = vadd.xlane.f32.xlu0 %v3488_v12  ;;  %2434 = vpow2.f32 %v1384_v8 }
 0x315   :  { %v1217_v30 = vsub.f32 %v3228_v6, %v1185_v53  ;;  %v1313_v63 = vsub.f32 %v3241_v48, %v1185_v53 }
 0x316   :  { %v1069_v45 = vpop.xlane.xlu1 %1068  ;;  %v1233_v10 = vsub.f32 %v3231_v50, %v1201_v49  ;;  %v3500_v6 = vpop.eup %2420  ;;  %v1329_v9 = vsub.f32 %v3239_v36, %v1201_v49 }
 0x317   :  { %v1101_v5 = vpop.xlane.xlu0 %1100  ;;  %1484 = vadd.xlane.f32.xlu1 %v3492_v42  ;;  %v1258_v34 = vmul.f32 1.442695, %v1217_v30  ;;  %v3504_v25 = vpop.eup %2422  ;;  %v1354_v59 = vmul.f32 1.442695, %v1313_v63 }
 0x318   :  { %1516 = vadd.xlane.f32.xlu0 %v3496_v31  ;;  %v1290_v15 = vmul.f32 1.442695, %v1233_v10  ;;  %v3508_v3 = vpop.eup %2424  ;;  %v1386_v7 = vmul.f32 1.442695, %v1329_v9 }
 0x319   :  { %2436 = vpow2.f32 %v1258_v34  ;;  %v3510_v41 = vpop.eup %2426  ;;  %v4116_v34 = vld [vmem:[#allocation23_spill] sm:$0xff] }
 0x31a   :  { %v1133_v61 = vpop.xlane.xlu1 %1132  ;;  %2438 = vpow2.f32 %v1290_v15  ;;  %v4118_v15 = vld [vmem:[#allocation30_spill] sm:$0xff] }
 0x31b   :  { %v1165_v39 = vpop.xlane.xlu0 %1164  ;;  %v1186_v21 = vmax.f32 %v1069_v45, %v1133_v61  ;;  %1422 = vadd.xlane.f32.xlu1 %v3500_v6  ;;  %2440 = vpow2.f32 %v1354_v59  ;;  %v4117_v61 = vld [vmem:[#allocation37_spill] sm:$0xff] }
 0x31c   :  { %v1202_v50 = vmax.f32 %v1101_v5, %v1165_v39  ;;  %1454 = vadd.xlane.f32.xlu0 %v3504_v25  ;;  %2442 = vpow2.f32 %v1386_v7 }
 0x31d   :  { %v1218_v48 = vsub.f32 %v3250_v35, %v1186_v21  ;;  %v1314_v29 = vsub.f32 %v3263_v43, %v1186_v21 }
 0x31e   :  { %v1071_v36 = vpop.xlane.xlu1 %1070  ;;  %v1234_v19 = vsub.f32 %v3253_v51, %v1202_v50  ;;  %v3516_v35 = vpop.eup %2428  ;;  %v1330_v53 = vsub.f32 %v3261_v11, %v1202_v50 }
 0x31f   :  { %v1103_v38 = vpop.xlane.xlu0 %1102  ;;  %1486 = vadd.xlane.f32.xlu1 %v3508_v3  ;;  %v1260_v52 = vmul.f32 1.442695, %v1218_v48  ;;  %v3520_v51 = vpop.eup %2430  ;;  %v1356_v30 = vmul.f32 1.442695, %v1314_v29 }
 0x320   :  { %1518 = vadd.xlane.f32.xlu0 %v3510_v41  ;;  %v1292_v28 = vmul.f32 1.442695, %v1234_v19  ;;  %v3524_v45 = vpop.eup %2432  ;;  %v1388_v10 = vmul.f32 1.442695, %v1330_v53 }
 0x321   :  { %2444 = vpow2.f32 %v1260_v52  ;;  %v3528_v63 = vpop.eup %2434  ;;  %v4119_v52 = vld [vmem:[#allocation44_spill] sm:$0xff] }
 0x322   :  { %v1135_v26 = vpop.xlane.xlu1 %1134  ;;  %2446 = vpow2.f32 %v1292_v28 }
 0x323   :  { %v1167_v17 = vpop.xlane.xlu0 %1166  ;;  %v1187_v49 = vmax.f32 %v1071_v36, %v1135_v26  ;;  %1424 = vadd.xlane.f32.xlu1 %v3516_v35  ;;  %2448 = vpow2.f32 %v1356_v30 }
 0x324   :  { %v1203_v46 = vmax.f32 %v1103_v38, %v1167_v17  ;;  %1456 = vadd.xlane.f32.xlu0 %v3520_v51  ;;  %2450 = vpow2.f32 %v1388_v10 }
 0x325   :  { %v1219_v43 = vsub.f32 %v3272_v54, %v1187_v49  ;;  %v1315_v39 = vsub.f32 %v4117_v61, %v1187_v49  ;;  %v4122_v61 = vld [vmem:[#allocation64_spill] sm:$0xff] }
 0x326   :  { %v1073_v5 = vpop.xlane.xlu1 %1072  ;;  %v1235_v11 = vsub.f32 %v4116_v34, %v1203_v46  ;;  %v3532_v54 = vpop.eup %2436  ;;  %v1331_v21 = vsub.f32 %v4118_v15, %v1203_v46  ;;  %v4120_v46 = vld [vmem:[#allocation51_spill] sm:$0xff] }
 0x327   :  { %v1105_v8 = vpop.xlane.xlu0 %1104  ;;  %1488 = vadd.xlane.f32.xlu1 %v3524_v45  ;;  %v1262_v9 = vmul.f32 1.442695, %v1219_v43  ;;  %v3536_v38 = vpop.eup %2438  ;;  %v1358_v19 = vmul.f32 1.442695, %v1315_v39 }
 0x328   :  { %1520 = vadd.xlane.f32.xlu0 %v3528_v63  ;;  %v1294_v48 = vmul.f32 1.442695, %v1235_v11  ;;  %v3540_v26 = vpop.eup %2440  ;;  %v1390_v17 = vmul.f32 1.442695, %v1331_v21 }
 0x329   :  { %2452 = vpow2.f32 %v1262_v9  ;;  %v3542_v49 = vpop.eup %2442 }
 0x32a   :  { %v1137_v50 = vpop.xlane.xlu1 %1136  ;;  %2454 = vpow2.f32 %v1294_v48  ;;  %v4123_v48 = vld [vmem:[#allocation32_spill] sm:$0xff] }
 0x32b   :  { %v1169_v59 = vpop.xlane.xlu0 %1168  ;;  %v1188_v7 = vmax.f32 %v1073_v5, %v1137_v50  ;;  %1426 = vadd.xlane.f32.xlu1 %v3532_v54  ;;  %2456 = vpow2.f32 %v1358_v19  ;;  %v4121_v5 = vld [vmem:[#allocation25_spill] sm:$0xff] }
 0x32c   :  { %v1204_v36 = vmax.f32 %v1105_v8, %v1169_v59  ;;  %1458 = vadd.xlane.f32.xlu0 %v3536_v38  ;;  %2458 = vpow2.f32 %v1390_v17 }
 0x32d   :  { %v1220_v29 = vsub.f32 %v4119_v52, %v1188_v7  ;;  %v1316_v8 = vsub.f32 %v4121_v5, %v1188_v7 }
 0x32e   :  { %v1075_v28 = vpop.xlane.xlu1 %1074  ;;  %v1236_v30 = vsub.f32 %v4120_v46, %v1204_v36  ;;  %v3548_v10 = vpop.eup %2444  ;;  %v1332_v39 = vsub.f32 %v4122_v61, %v1204_v36  ;;  %v4125_v46 = vld [vmem:[#allocation39_spill] sm:$0xff] }
 0x32f   :  { %v1107_v53 = vpop.xlane.xlu0 %1106  ;;  %1490 = vadd.xlane.f32.xlu1 %v3540_v26  ;;  %v1264_v43 = vmul.f32 1.442695, %v1220_v29  ;;  %v3552_v50 = vpop.eup %2446  ;;  %v1360_v59 = vmul.f32 1.442695, %v1316_v8  ;;  %v4129_v8 = vld [vmem:[#allocation46_spill] sm:$0xff] }
 0x330   :  { %1522 = vadd.xlane.f32.xlu0 %v3542_v49  ;;  %v1296_v9 = vmul.f32 1.442695, %v1236_v30  ;;  %v3556_v19 = vpop.eup %2448  ;;  %v1392_v17 = vmul.f32 1.442695, %v1332_v39  ;;  %v4127_v30 = vld [vmem:[#allocation53_spill] sm:$0xff] }
 0x331   :  { %2460 = vpow2.f32 %v1264_v43  ;;  %4124 = vst [vmem:[#allocation34_spill] sm:$0xff] %v3556_v19 }
 0x332   :  { %v1139_v34 = vpop.xlane.xlu1 %1138  ;;  %2462 = vpow2.f32 %v1296_v9 }
 0x333   :  { %v1171_v11 = vpop.xlane.xlu0 %1170  ;;  %v1189_v15 = vmax.f32 %v1075_v28, %v1139_v34  ;;  %1428 = vadd.xlane.f32.xlu1 %v3548_v10  ;;  %v3560_v28 = vpop.eup %2450  ;;  %2464 = vpow2.f32 %v1360_v59 }
 0x334   :  { %v1205_v21 = vmax.f32 %v1107_v53, %v1171_v11  ;;  %1460 = vadd.xlane.f32.xlu0 %v3552_v50  ;;  %4126 = vst [vmem:[#allocation41_spill] sm:$0xff] %v3560_v28  ;;  %2466 = vpow2.f32 %v1392_v17 }
 0x335   :  { %v1221_v7 = vsub.f32 %v4123_v48, %v1189_v15  ;;  %v1317_v43 = vsub.f32 %v4127_v30, %v1189_v15 }
 0x336   :  { %v1077_v52 = vpop.xlane.xlu1 %1076  ;;  %v1237_v36 = vsub.f32 %v4125_v46, %v1205_v21  ;;  %v3564_v5 = vpop.eup %2452  ;;  %v1333_v34 = vsub.f32 %v4129_v8, %v1205_v21 }
 0x337   :  { %v1109_v29 = vpop.xlane.xlu0 %1108  ;;  %1492 = vadd.xlane.f32.xlu1 %v3556_v19  ;;  %v1266_v53 = vmul.f32 1.442695, %v1221_v7  ;;  %4128 = vst [vmem:[#allocation48_spill] sm:$0xff] %v3564_v5  ;;  %v3568_v46 = vpop.eup %2454  ;;  %v1362_v59 = vmul.f32 1.442695, %v1317_v43  ;;  %v4131_v7 = vld [vmem:[#allocation66_spill] sm:$0xff] }
 0x338   :  { %1524 = vadd.xlane.f32.xlu0 %v3560_v28  ;;  %v1298_v9 = vmul.f32 1.442695, %v1237_v36  ;;  %4130 = vst [vmem:[#allocation57_spill] sm:$0xff] %v3568_v46  ;;  %v3572_v30 = vpop.eup %2456  ;;  %v1394_v28 = vmul.f32 1.442695, %v1333_v34  ;;  %v4134_v36 = vld [vmem:[#allocation38_spill] sm:$0xff] }
 0x339   :  { %2468 = vpow2.f32 %v1266_v53  ;;  %v3574_v19 = vpop.eup %2458 }
 0x33a   :  { %v1141_v11 = vpop.xlane.xlu1 %1140  ;;  %4132 = vst [vmem:[#allocation68_spill] sm:$0xff] %v3574_v19  ;;  %2470 = vpow2.f32 %v1298_v9 }
 0x33b   :  { %v1173_v61 = vpop.xlane.xlu0 %1172  ;;  %v1190_v39 = vmax.f32 %v1077_v52, %v1141_v11  ;;  %1430 = vadd.xlane.f32.xlu1 %v3564_v5  ;;  %v4133_v52 = vld [vmem:[#allocation24_spill] sm:$0xff]  ;;  %2472 = vpow2.f32 %v1362_v59 }
 0x33c   :  { %v1206_v48 = vmax.f32 %v1109_v29, %v1173_v61  ;;  %1462 = vadd.xlane.f32.xlu0 %v3568_v46  ;;  %2474 = vpow2.f32 %v1394_v28 }
 0x33d   :  { %v1222_v15 = vsub.f32 %v4131_v7, %v1190_v39  ;;  %v1318_v53 = vsub.f32 %v4134_v36, %v1190_v39  ;;  %v4135_v7 = vld [vmem:[#allocation31_spill] sm:$0xff]  ;;  %v4136_v39 = vld [vmem:[#allocation45_spill] sm:$0xff] }
 0x33e   :  { %v1079_v21 = vpop.xlane.xlu1 %1078  ;;  %v1238_v29 = vsub.f32 %v4133_v52, %v1206_v48  ;;  %v3580_v43 = vpop.eup %2460  ;;  %v1334_v46 = vsub.f32 %v4135_v7, %v1206_v48  ;;  %v1400_v7 = vstv %s2270_s6 }
 0x33f   :  { %v1111_v8 = vpop.xlane.xlu0 %1110  ;;  %1494 = vadd.xlane.f32.xlu1 %v3572_v30  ;;  %v1268_v17 = vmul.f32 1.442695, %v1222_v15  ;;  %v3584_v52 = vpop.eup %2462  ;;  %v1364_v59 = vmul.f32 1.442695, %v1318_v53 }
 0x340   :  { %1526 = vadd.xlane.f32.xlu0 %v3574_v19  ;;  %v1300_v61 = vmul.f32 1.442695, %v1238_v29  ;;  %v3588_v36 = vpop.eup %2464  ;;  %v1396_v28 = vmul.f32 1.442695, %v1334_v46  ;;  %v4137_v29 = vld [vmem:[#allocation52_spill] sm:$0xff] }
 0x341   :  { %2476 = vpow2.f32 %v1268_v17  ;;  %v3592_v48 = vpop.eup %2466 }
 0x342   :  { %v1143_v11 = vpop.xlane.xlu1 %1142  ;;  %2478 = vpow2.f32 %v1300_v61 }
 0x343   :  { %v1175_v34 = vpop.xlane.xlu0 %1174  ;;  %v1191_v5 = vmax.f32 %v1079_v21, %v1143_v11  ;;  %1432 = vadd.xlane.f32.xlu1 %v3580_v43  ;;  %2480 = vpow2.f32 %v1364_v59 }
 0x344   :  { %v1207_v9 = vmax.f32 %v1111_v8, %v1175_v34  ;;  %1464 = vadd.xlane.f32.xlu0 %v3584_v52  ;;  %v4138_v8 = vld [vmem:[#allocation27_spill] sm:$0xff]  ;;  %2482 = vpow2.f32 %v1396_v28  ;;  %v4139_v34 = vld [vmem:[#allocation65_spill] sm:$0xff] }
 0x345   :  { %v1223_v15 = vsub.f32 %v4136_v39, %v1191_v5  ;;  %v1319_v17 = vsub.f32 %v4138_v8, %v1191_v5 }
 0x346   :  { %v1239_v19 = vsub.f32 %v4137_v29, %v1207_v9  ;;  %v3596_v53 = vpop.eup %2468  ;;  %v1335_v61 = vsub.f32 %v4139_v34, %v1207_v9  ;;  %v1402_v9 = vstv %s2271_s23  ;;  %v4145_v34 = vld [vmem:[#allocation20_spill] sm:$0xff] }
 0x347   :  { %1496 = vadd.xlane.f32.xlu1 %v3588_v36  ;;  %v1270_v21 = vmul.f32 1.442695, %v1223_v15  ;;  %v3600_v46 = vpop.eup %2470  ;;  %v1366_v39 = vmul.f32 1.442695, %v1319_v17  ;;  %v4141_v15 = vld [vmem:[#allocation54_spill] sm:$0xff]  ;;  %v1404_v17 = vstv %s2272_s24 }
 0x348   :  { %1528 = vadd.xlane.f32.xlu0 %v3592_v48  ;;  %v1302_v11 = vmul.f32 1.442695, %v1239_v19  ;;  %v3603_v59 = vpop.eup %2472  ;;  %v1401_v29 = vmul.f32 %v1400_v7, %v4141_v15  ;;  %v1398_v19 = vmul.f32 1.442695, %v1335_v61  ;;  %v1405_v61 = vmul.f32 %v1404_v17, %v4145_v34  ;;  %v4146_v7 = vld [vmem:[#allocation55_spill] sm:$0xff] }
 0x349   :  { %2484 = vpow2.f32 %v1270_v21  ;;  %v3605_v5 = vpop.eup %2474 }
 0x34a   :  { %4140 = vst [vmem:[#allocation26_spill] sm:$0xff] %v3605_v5  ;;  %2486 = vpow2.f32 %v1302_v11  ;;  %v1403_v21 = vadd.f32 %v1402_v9, %v1401_v29 }
 0x34b   :  { %1434 = vadd.xlane.f32.xlu1 %v3596_v53  ;;  %2488 = vpow2.f32 %v1366_v39 }
 0x34c   :  { %1466 = vadd.xlane.f32.xlu0 %v3600_v46  ;;  %2490 = vpow2.f32 %v1398_v19  ;;  %v1575_v15 = vrot.slane %v1403_v21, %v4146_v7 }
 0x34e   :  { %v3610_v28 = vpop.eup %2476  ;;  %v1576_v9 = vcombine.high %v1575_v15, %v1575_v15 }
 0x34f   :  { %1498 = vadd.xlane.f32.xlu1 %v3603_v59  ;;  %4142 = vst [vmem:[#allocation33_spill] sm:$0xff] %v3610_v28  ;;  %v3613_v8 = vpop.eup %2478 }
 0x350   :  { %1530 = vadd.xlane.f32.xlu0 %v3605_v5  ;;  %4143 = vst [vmem:[#allocation40_spill] sm:$0xff] %v3613_v8  ;;  %v3616_v11 = vpop.eup %2480  ;;  %v1406_v5 = vstv %s2273_s3  ;;  %v1590_v34 = vrot.slane %v1576_v9, %v4146_v7 }
 0x351   :  { %4144 = vst [vmem:[#allocation47_spill] sm:$0xff] %v3616_v11  ;;  %v3621_v39 = vpop.eup %2482  ;;  %v1407_v19 = vadd.f32 %v1406_v5, %v1405_v61 }
 0x352   :  { %4147 = vst [vmem:[#allocation56_spill] sm:$0xff] %v3621_v39 }
 0x353   :  { %1436 = vadd.xlane.f32.xlu1 %v3610_v28  ;;  %v1583_v28 = vrot.slane %v1575_v15, %v4146_v7  ;;  %v1704_v17 = vrot.slane %v1407_v19, %v4146_v7 }
 0x354   :  { %1468 = vadd.xlane.f32.xlu0 %v3613_v8 }
 0x355   :  { %v1705_v15 = vcombine.high %v1704_v17, %v1704_v17 }
 0x356   :  { %v3624_v29 = vpop.eup %2484 }
 0x357   :  { %1500 = vadd.xlane.f32.xlu1 %v3616_v11  ;;  %4148 = vst [vmem:[#allocation67_spill] sm:$0xff] %v3624_v29  ;;  %v3628_v8 = vpop.eup %2486  ;;  %v4150_v11 = vld [vmem:[#allocation19_spill] sm:$0xff]  ;;  %v1719_v9 = vrot.slane %v1705_v15, %v4146_v7 }
 0x358   :  { %1532 = vadd.xlane.f32.xlu0 %v3621_v39  ;;  %4149 = vst [vmem:[#allocation29_spill] sm:$0xff] %v3628_v8  ;;  %v3631_v21 = vpop.eup %2488  ;;  %v3636_v39 = vrot.slane %v1583_v28, %v4150_v11 }
 0x359   :  { %v3639_v5 = vpop.eup %2490 }
 0x35a   :  { %4151 = vst [vmem:[#allocation36_spill] sm:$0xff] %v3639_v5  ;;  %v1601_v61 = vmul.f32 %v3386_v57, %v3636_v39  ;;  %v1602_v28 = vmul.f32 %v3390_v40, %v3636_v39 }
 0x35b   :  { %1438 = vadd.xlane.f32.xlu1 %v3624_v29  ;;  %v3646_v29 = vrot.slane %v1590_v34, %v4150_v11  ;;  %v3661_v34 = vrot.slane %v1719_v9, %v4150_v11 }
 0x35c   :  { %1470 = vadd.xlane.f32.xlu0 %v3628_v8  ;;  %v1712_v8 = vrot.slane %v1704_v17, %v4146_v7 }
 0x35d   :  { %v1617_v19 = vmul.f32 %v3396_v0, %v3646_v29  ;;  %v1618_v57 = vmul.f32 %v3400_v4, %v3646_v29  ;;  %v1747_v4 = vmul.f32 %v3414_v20, %v3661_v34  ;;  %v1748_v20 = vmul.f32 %v3432_v2, %v3661_v34 }
 0x35f   :  { %1502 = vadd.xlane.f32.xlu1 %v3631_v21 }
 0x360   :  { %1534 = vadd.xlane.f32.xlu0 %v3639_v5  ;;  %v3654_v5 = vrot.slane %v1712_v8, %v4150_v11  ;;  %v1746_v8 = vmul.f32 %v3412_v47, %v3661_v34 }
 0x362   :  { %v1730_v17 = vmul.f32 %v3404_v33, %v3654_v5  ;;  %v1731_v40 = vmul.f32 %v3408_v22, %v3654_v5  ;;  %v1603_v33 = vmul.f32 %v3420_v18, %v3636_v39  ;;  %v1619_v22 = vmul.f32 %v3424_v16, %v3646_v29 }
 0x363   :  { %1633 = vadd.xlane.f32.xlu1 %v1601_v61  ;;  %v1732_v47 = vmul.f32 %v3428_v56, %v3654_v5  ;;  %v1604_v16 = vmul.f32 %v3436_v32, %v3636_v39  ;;  %v1620_v56 = vmul.f32 %v3440_v55, %v3646_v29  ;;  %v1621_v55 = vmul.f32 %v3456_v60, %v3646_v29 }
 0x364   :  { %1635 = vadd.xlane.f32.xlu0 %v1602_v28  ;;  %v1622_v60 = vmul.f32 %v3472_v1, %v3646_v29  ;;  %v1623_v1 = vmul.f32 %v3488_v12, %v3646_v29  ;;  %v1624_v12 = vmul.f32 %v3504_v25, %v3646_v29  ;;  %v1625_v25 = vmul.f32 %v3520_v51, %v3646_v29 }
 0x365   :  { %v1626_v51 = vmul.f32 %v3536_v38, %v3646_v29  ;;  %v1627_v38 = vmul.f32 %v3552_v50, %v3646_v29  ;;  %v4155_v50 = vld [vmem:[#allocation57_spill] sm:$0xff] }
 0x367   :  { %1665 = vadd.xlane.f32.xlu1 %v1617_v19 }
 0x368   :  { %1667 = vadd.xlane.f32.xlu0 %v1618_v57  ;;  %v1409_v0 = vpop.xlane.xlu1 %1408 }
 0x369   :  { %v1411_v7 = vpop.xlane.xlu0 %1410 }
 0x36b   :  { %1762 = vadd.xlane.f32.xlu1 %v1730_v17 }
 0x36c   :  { %1764 = vadd.xlane.f32.xlu0 %v1731_v40 }
 0x36f   :  { %1794 = vadd.xlane.f32.xlu1 %v1746_v8  ;;  %v1733_v8 = vmul.f32 %v3444_v23, %v3654_v5 }
 0x370   :  { %v1441_v61 = vpop.xlane.xlu1 %1440  ;;  %1796 = vadd.xlane.f32.xlu0 %v1747_v4 }
 0x371   :  { %v1443_v11 = vpop.xlane.xlu0 %1442 }
 0x373   :  { %1637 = vadd.xlane.f32.xlu1 %v1603_v33 }
 0x374   :  { %v1473_v15 = vpop.xlane.xlu1 %1472  ;;  %1669 = vadd.xlane.f32.xlu0 %v1619_v22  ;;  %v1734_v22 = vmul.f32 %v3460_v37, %v3654_v5 }
 0x375   :  { %v3673_v28 = vadd.f32 %v1473_v15, %v1409_v0  ;;  %v1475_v19 = vpop.xlane.xlu0 %1474  ;;  %v1750_v15 = vmul.f32 %v3464_v24, %v3661_v34 }
 0x376   :  { %v3677_v9 = vadd.f32 %v1475_v19, %v1411_v7  ;;  %v1749_v7 = vmul.f32 %v3446_v27, %v3661_v34  ;;  %v1606_v19 = vmul.f32 %v3468_v44, %v3636_v39 }
 0x377   :  { %1766 = vadd.xlane.f32.xlu1 %v1732_v47  ;;  %2492 = vrcp.f32 %v3673_v28  ;;  %v1924_v28 = vld [vmem:[#allocation10 + $0x10] sm:$0xff] }
 0x378   :  { %v1505_v18 = vpop.xlane.xlu1 %1504  ;;  %1798 = vadd.xlane.f32.xlu0 %v1748_v20  ;;  %2494 = vrcp.f32 %v3677_v9  ;;  %v1923_v9 = vld [vmem:[#allocation10 + $0x8] sm:$0xff] }
 0x379   :  { %v3681_v57 = vadd.f32 %v1505_v18, %v1441_v61  ;;  %v1507_v17 = vpop.xlane.xlu0 %1506  ;;  %v1605_v61 = vmul.f32 %v3452_v62, %v3636_v39 }
 0x37a   :  { %v3685_v40 = vadd.f32 %v1507_v17, %v1443_v11  ;;  %v1751_v17 = vmul.f32 %v3478_v58, %v3661_v34 }
 0x37b   :  { %1639 = vadd.xlane.f32.xlu1 %v1604_v16  ;;  %v1735_v16 = vmul.f32 %v3476_v13, %v3654_v5  ;;  %2496 = vrcp.f32 %v3681_v57 }
 0x37c   :  { %v1413_v0 = vpop.xlane.xlu1 %1412  ;;  %1671 = vadd.xlane.f32.xlu0 %v1620_v56  ;;  %2498 = vrcp.f32 %v3685_v40  ;;  %v4167_v40 = vld [vmem:[#allocation18_spill] sm:$0xff] }
 0x37d   :  { %v1445_v2 = vpop.xlane.xlu0 %1444 }
 0x37f   :  { %1768 = vadd.xlane.f32.xlu1 %v1733_v8 }
 0x380   :  { %v1477_v4 = vpop.xlane.xlu1 %1476  ;;  %1800 = vadd.xlane.f32.xlu0 %v1749_v7  ;;  %v1736_v7 = vmul.f32 %v3492_v42, %v3654_v5 }
 0x381   :  { %v3693_v32 = vadd.f32 %v1477_v4, %v1413_v0  ;;  %v1509_v33 = vpop.xlane.xlu0 %1508  ;;  %v1607_v0 = vmul.f32 %v3484_v14, %v3636_v39  ;;  %v1752_v4 = vmul.f32 %v3496_v31, %v3661_v34 }
 0x382   :  { %v3697_v11 = vadd.f32 %v1509_v33, %v1445_v2  ;;  %v1608_v33 = vmul.f32 %v3500_v6, %v3636_v39 }
 0x383   :  { %1641 = vadd.xlane.f32.xlu1 %v1605_v61  ;;  %2500 = vrcp.f32 %v3693_v32 }
 0x384   :  { %v1415_v23 = vpop.xlane.xlu1 %1414  ;;  %1673 = vadd.xlane.f32.xlu0 %v1621_v55  ;;  %2502 = vrcp.f32 %v3697_v11 }
 0x385   :  { %v1447_v27 = vpop.xlane.xlu0 %1446 }
 0x387   :  { %1770 = vadd.xlane.f32.xlu1 %v1734_v22  ;;  %v1737_v22 = vmul.f32 %v3508_v3, %v3654_v5 }
 0x388   :  { %v1479_v47 = vpop.xlane.xlu1 %1478  ;;  %1802 = vadd.xlane.f32.xlu0 %v1750_v15 }
 0x389   :  { %v3705_v62 = vadd.f32 %v1479_v47, %v1415_v23  ;;  %v1511_v20 = vpop.xlane.xlu0 %1510  ;;  %v1609_v47 = vmul.f32 %v3516_v35, %v3636_v39 }
 0x38a   :  { %v3709_v18 = vadd.f32 %v1511_v20, %v1447_v27  ;;  %v1753_v27 = vmul.f32 %v3510_v41, %v3661_v34 }
 0x38b   :  { %1643 = vadd.xlane.f32.xlu1 %v1606_v19  ;;  %2504 = vrcp.f32 %v3705_v62 }
 0x38c   :  { %v1417_v37 = vpop.xlane.xlu1 %1416  ;;  %1675 = vadd.xlane.f32.xlu0 %v1622_v60  ;;  %v1738_v60 = vmul.f32 %v3524_v45, %v3654_v5  ;;  %2506 = vrcp.f32 %v3709_v18 }
 0x38d   :  { %v1449_v24 = vpop.xlane.xlu0 %1448 }
 0x38f   :  { %1772 = vadd.xlane.f32.xlu1 %v1735_v16 }
 0x390   :  { %v1481_v56 = vpop.xlane.xlu1 %1480  ;;  %1804 = vadd.xlane.f32.xlu0 %v1751_v17 }
 0x391   :  { %v3717_v44 = vadd.f32 %v1481_v56, %v1417_v37  ;;  %v1513_v8 = vpop.xlane.xlu0 %1512  ;;  %v1754_v37 = vmul.f32 %v3528_v63, %v3661_v34 }
 0x392   :  { %v3721_v2 = vadd.f32 %v1513_v8, %v1449_v24  ;;  %v1610_v24 = vmul.f32 %v3532_v54, %v3636_v39  ;;  %v1755_v8 = vmul.f32 %v3542_v49, %v3661_v34 }
 0x393   :  { %1645 = vadd.xlane.f32.xlu1 %v1607_v0  ;;  %v1739_v0 = vmul.f32 %v3540_v26, %v3654_v5  ;;  %2508 = vrcp.f32 %v3717_v44 }
 0x394   :  { %v1419_v13 = vpop.xlane.xlu1 %1418  ;;  %1677 = vadd.xlane.f32.xlu0 %v1623_v1  ;;  %2510 = vrcp.f32 %v3721_v2 }
 0x395   :  { %v1451_v58 = vpop.xlane.xlu0 %1450 }
 0x397   :  { %1774 = vadd.xlane.f32.xlu1 %v1736_v7 }
 0x398   :  { %v1483_v61 = vpop.xlane.xlu1 %1482  ;;  %1806 = vadd.xlane.f32.xlu0 %v1752_v4  ;;  %v4152_v4 = vld [vmem:[#allocation34_spill] sm:$0xff] }
 0x399   :  { %v3729_v14 = vadd.f32 %v1483_v61, %v1419_v13  ;;  %v1515_v55 = vpop.xlane.xlu0 %1514  ;;  %v1611_v13 = vmul.f32 %v3548_v10, %v3636_v39  ;;  %v1740_v61 = vmul.f32 %v4152_v4, %v3654_v5 }
 0x39a   :  { %v3733_v23 = vadd.f32 %v1515_v55, %v1451_v58 }
 0x39b   :  { %1647 = vadd.xlane.f32.xlu1 %v1608_v33  ;;  %v4153_v33 = vld [vmem:[#allocation41_spill] sm:$0xff]  ;;  %2512 = vrcp.f32 %v3729_v14 }
 0x39c   :  { %v1421_v42 = vpop.xlane.xlu1 %1420  ;;  %1679 = vadd.xlane.f32.xlu0 %v1624_v12  ;;  %v1756_v55 = vmul.f32 %v4153_v33, %v3661_v34  ;;  %2514 = vrcp.f32 %v3733_v23 }
 0x39d   :  { %v1453_v31 = vpop.xlane.xlu0 %1452 }
 0x39f   :  { %1776 = vadd.xlane.f32.xlu1 %v1737_v22 }
 0x3a0   :  { %v1485_v15 = vpop.xlane.xlu1 %1484  ;;  %1808 = vadd.xlane.f32.xlu0 %v1753_v27 }
 0x3a1   :  { %v3741_v6 = vadd.f32 %v1485_v15, %v1421_v42  ;;  %v1517_v19 = vpop.xlane.xlu0 %1516  ;;  %v4154_v42 = vld [vmem:[#allocation48_spill] sm:$0xff]  ;;  %v1628_v15 = vmul.f32 %v4155_v50, %v3646_v29 }
 0x3a2   :  { %v3745_v20 = vadd.f32 %v1517_v19, %v1453_v31  ;;  %v1612_v22 = vmul.f32 %v4154_v42, %v3636_v39  ;;  %v1741_v19 = vmul.f32 %v3572_v30, %v3654_v5 }
 0x3a3   :  { %1649 = vadd.xlane.f32.xlu1 %v1609_v47  ;;  %2516 = vrcp.f32 %v3741_v6 }
 0x3a4   :  { %v1423_v3 = vpop.xlane.xlu1 %1422  ;;  %1681 = vadd.xlane.f32.xlu0 %v1625_v25  ;;  %2518 = vrcp.f32 %v3745_v20 }
 0x3a5   :  { %v1455_v41 = vpop.xlane.xlu0 %1454 }
 0x3a7   :  { %1778 = vadd.xlane.f32.xlu1 %v1738_v60 }
 0x3a8   :  { %v1487_v16 = vpop.xlane.xlu1 %1486  ;;  %1810 = vadd.xlane.f32.xlu0 %v1754_v37 }
 0x3a9   :  { %v3753_v35 = vadd.f32 %v1487_v16, %v1423_v3  ;;  %v1519_v17 = vpop.xlane.xlu0 %1518  ;;  %v4156_v3 = vld [vmem:[#allocation68_spill] sm:$0xff]  ;;  %v1613_v16 = vmul.f32 %v3580_v43, %v3636_v39 }
 0x3aa   :  { %v3757_v56 = vadd.f32 %v1519_v17, %v1455_v41  ;;  %v1757_v60 = vmul.f32 %v4156_v3, %v3661_v34 }
 0x3ab   :  { %1651 = vadd.xlane.f32.xlu1 %v1610_v24  ;;  %2520 = vrcp.f32 %v3753_v35 }
 0x3ac   :  { %v1425_v45 = vpop.xlane.xlu1 %1424  ;;  %1683 = vadd.xlane.f32.xlu0 %v1626_v51  ;;  %v1629_v51 = vmul.f32 %v3584_v52, %v3646_v29  ;;  %v1630_v52 = vmul.f32 %v3600_v46, %v3646_v29  ;;  %v4159_v46 = vld [vmem:[#allocation40_spill] sm:$0xff]  ;;  %2522 = vrcp.f32 %v3757_v56 }
 0x3ad   :  { %v1457_v63 = vpop.xlane.xlu0 %1456  ;;  %v1631_v42 = vmul.f32 %v4159_v46, %v3646_v29  ;;  %v1927_v46 = vld [vmem:[#allocation10 + $0x28] sm:$0xff] }
 0x3af   :  { %1780 = vadd.xlane.f32.xlu1 %v1739_v0 }
 0x3b0   :  { %v1489_v1 = vpop.xlane.xlu1 %1488  ;;  %1812 = vadd.xlane.f32.xlu0 %v1755_v8 }
 0x3b1   :  { %v3765_v54 = vadd.f32 %v1489_v1, %v1425_v45  ;;  %v1521_v7 = vpop.xlane.xlu0 %1520  ;;  %v1742_v45 = vmul.f32 %v3588_v36, %v3654_v5  ;;  %v1614_v1 = vmul.f32 %v3596_v53, %v3636_v39 }
 0x3b2   :  { %v3769_v58 = vadd.f32 %v1521_v7, %v1457_v63  ;;  %v1758_v63 = vmul.f32 %v3592_v48, %v3661_v34 }
 0x3b3   :  { %1653 = vadd.xlane.f32.xlu1 %v1611_v13 }
 0x3b4   :  { %v1427_v26 = vpop.xlane.xlu1 %1426  ;;  %1685 = vadd.xlane.f32.xlu0 %v1627_v38  ;;  %v1743_v38 = vmul.f32 %v3603_v59, %v3654_v5 }
 0x3b5   :  { %v1459_v49 = vpop.xlane.xlu0 %1458 }
 0x3b7   :  { %1782 = vadd.xlane.f32.xlu1 %v1740_v61 }
 0x3b8   :  { %v1491_v12 = vpop.xlane.xlu1 %1490  ;;  %1814 = vadd.xlane.f32.xlu0 %v1756_v55 }
 0x3b9   :  { %v3777_v10 = vadd.f32 %v1491_v12, %v1427_v26  ;;  %v1523_v31 = vpop.xlane.xlu0 %1522  ;;  %v4157_v26 = vld [vmem:[#allocation26_spill] sm:$0xff] }
 0x3ba   :  { %v3781_v27 = vadd.f32 %v1523_v31, %v1459_v49  ;;  %v1759_v4 = vmul.f32 %v4157_v26, %v3661_v34  ;;  %v4158_v49 = vld [vmem:[#allocation33_spill] sm:$0xff]  ;;  %v4160_v31 = vld [vmem:[#allocation47_spill] sm:$0xff] }
 0x3bb   :  { %1655 = vadd.xlane.f32.xlu1 %v1612_v22  ;;  %v1615_v33 = vmul.f32 %v4158_v49, %v3636_v39  ;;  %v1937_v22 = vld [vmem:[#allocation10 + $0x78] sm:$0xff]  ;;  %v1744_v50 = vmul.f32 %v4160_v31, %v3654_v5 }
 0x3bc   :  { %v1429_v47 = vpop.xlane.xlu1 %1428  ;;  %1687 = vadd.xlane.f32.xlu0 %v1628_v15  ;;  %2309 = vmatpush3.msra.mxu0 %v1937_v22 }
 0x3bd   :  { %v1461_v25 = vpop.xlane.xlu0 %1460 }
 0x3bf   :  { %1784 = vadd.xlane.f32.xlu1 %v1741_v19  ;;  %v1936_v19 = vld [vmem:[#allocation10 + $0x70] sm:$0xff] }
 0x3c0   :  { %v1493_v41 = vpop.xlane.xlu1 %1492  ;;  %1816 = vadd.xlane.f32.xlu0 %v1757_v60 }
 0x3c1   :  { %v3789_v37 = vadd.f32 %v1493_v41, %v1429_v47  ;;  %v1525_v24 = vpop.xlane.xlu0 %1524  ;;  %v4161_v47 = vmov 0.0   ;;  %v1935_v41 = vld [vmem:[#allocation10 + $0x68] sm:$0xff] }
 0x3c2   :  { %v3793_v17 = vadd.f32 %v1525_v24, %v1461_v25  ;;  %2310 = vmatprep.subr.mxu0 %v4161_v47  ;;  %v4162_v25 = vld [vmem:[#allocation56_spill] sm:$0xff]  ;;  %v4163_v24 = vld [vmem:[#allocation67_spill] sm:$0xff] }
 0x3c3   :  { %1657 = vadd.xlane.f32.xlu1 %v1613_v16  ;;  %v1760_v3 = vmul.f32 %v4162_v25, %v3661_v34  ;;  %2311 = vmatpush3.msra.mxu0 %v1936_v19  ;;  %v1925_v19 = vld [vmem:[#allocation10 + $0x18] sm:$0xff] }
 0x3c4   :  { %v1431_v30 = vpop.xlane.xlu1 %1430  ;;  %1689 = vadd.xlane.f32.xlu0 %v1629_v51  ;;  %2312 = vmatprep.subr.mxu0 %v4161_v47  ;;  %v1616_v51 = vmul.f32 %v4163_v24, %v3636_v39  ;;  %v1745_v39 = vmul.f32 %v3631_v21, %v3654_v5  ;;  %v1922_v24 = vld [vmem:[#allocation10] sm:$0xff] }
 0x3c5   :  { %v1463_v0 = vpop.xlane.xlu0 %1462  ;;  %2313 = vmatpush3.msra.mxu0 %v1935_v41 }
 0x3c6   :  { %2314 = vmatprep.subr.mxu0 %v4161_v47 }
 0x3c7   :  { %1786 = vadd.xlane.f32.xlu1 %v1742_v45 }
 0x3c8   :  { %v1495_v8 = vpop.xlane.xlu1 %1494  ;;  %1818 = vadd.xlane.f32.xlu0 %v1758_v63  ;;  %v4164_v63 = vld [vmem:[#allocation29_spill] sm:$0xff] }
 0x3c9   :  { %v3801_v43 = vadd.f32 %v1495_v8, %v1431_v30  ;;  %v1527_v13 = vpop.xlane.xlu0 %1526  ;;  %v1934_v30 = vld [vmem:[#allocation10 + $0x60] sm:$0xff]  ;;  %v1632_v8 = vmul.f32 %v4164_v63, %v3646_v29  ;;  %v1931_v29 = vld [vmem:[#allocation10 + $0x48] sm:$0xff] }
 0x3ca   :  { %v3805_v7 = vadd.f32 %v1527_v13, %v1463_v0  ;;  %2315 = vmatpush3.msra.mxu0 %v1934_v30  ;;  %v1933_v13 = vld [vmem:[#allocation10 + $0x58] sm:$0xff] }
 0x3cb   :  { %1659 = vadd.xlane.f32.xlu1 %v1614_v1  ;;  %2316 = vmatprep.subr.mxu0 %v4161_v47 }
 0x3cc   :  { %v1433_v36 = vpop.xlane.xlu1 %1432  ;;  %1691 = vadd.xlane.f32.xlu0 %v1630_v52  ;;  %2317 = vmatpush3.msra.mxu0 %v1933_v13 }
 0x3cd   :  { %v1465_v48 = vpop.xlane.xlu0 %1464  ;;  %2318 = vmatprep.subr.mxu0 %v4161_v47 }
 0x3cf   :  { %1788 = vadd.xlane.f32.xlu1 %v1743_v38  ;;  %v4165_v38 = vld [vmem:[#allocation36_spill] sm:$0xff] }
 0x3d0   :  { %v1497_v61 = vpop.xlane.xlu1 %1496  ;;  %1820 = vadd.xlane.f32.xlu0 %v1759_v4  ;;  %v1930_v4 = vld [vmem:[#allocation10 + $0x40] sm:$0xff] }
 0x3d1   :  { %v3813_v53 = vadd.f32 %v1497_v61, %v1433_v36  ;;  %v1529_v55 = vpop.xlane.xlu0 %1528  ;;  %v1932_v36 = vld [vmem:[#allocation10 + $0x50] sm:$0xff] }
 0x3d2   :  { %v3817_v12 = vadd.f32 %v1529_v55, %v1465_v48  ;;  %v1761_v48 = vmul.f32 %v4165_v38, %v3661_v34  ;;  %2319 = vmatpush3.msra.mxu0 %v1932_v36  ;;  %v1929_v34 = vld [vmem:[#allocation10 + $0x38] sm:$0xff]  ;;  %v1928_v55 = vld [vmem:[#allocation10 + $0x30] sm:$0xff] }
 0x3d3   :  { %1661 = vadd.xlane.f32.xlu1 %v1615_v33  ;;  %2320 = vmatprep.subr.mxu0 %v4161_v47 }
 0x3d4   :  { %v1435_v59 = vpop.xlane.xlu1 %1434  ;;  %1693 = vadd.xlane.f32.xlu0 %v1631_v42  ;;  %2321 = vmatpush3.msra.mxu0 %v1931_v29 }
 0x3d5   :  { %v1467_v15 = vpop.xlane.xlu0 %1466  ;;  %2322 = vmatprep.subr.mxu0 %v4161_v47 }
 0x3d6   :  { %2323 = vmatpush3.msra.mxu0 %v1930_v4 }
 0x3d7   :  { %1790 = vadd.xlane.f32.xlu1 %v1744_v50  ;;  %2324 = vmatprep.subr.mxu0 %v4161_v47 }
 0x3d8   :  { %v1499_v60 = vpop.xlane.xlu1 %1498  ;;  %1822 = vadd.xlane.f32.xlu0 %v1760_v3  ;;  %2325 = vmatpush3.msra.mxu0 %v1929_v34  ;;  %v4166_v3 = vlaneseq }
 0x3d9   :  { %v3827_v16 = vadd.f32 %v1499_v60, %v1435_v59  ;;  %v1531_v45 = vpop.xlane.xlu0 %1530  ;;  %2326 = vmatprep.subr.mxu0 %v4161_v47  ;;  %v1926_v59 = vld [vmem:[#allocation10 + $0x20] sm:$0xff] }
 0x3da   :  { %v3832_v0 = vadd.f32 %v1531_v45, %v1467_v15  ;;  %2327 = vmatpush3.msra.mxu0 %v1928_v55  ;;  %v3863_v60 = vand.u32 127, %v4166_v3 }
 0x3db   :  { %1663 = vadd.xlane.f32.xlu1 %v1616_v51  ;;  %2328 = vmatprep.subr.mxu0 %v4161_v47 }
 0x3dc   :  { %v1437_v1 = vpop.xlane.xlu1 %1436  ;;  %1695 = vadd.xlane.f32.xlu0 %v1632_v8  ;;  %2329 = vmatpush3.msra.mxu0 %v1927_v46  ;;  %v1983_v57 = vadd.s32 4294967288, %v3863_v60  ;;  %v1981_v45 = vsub.s32 %v3863_v60, %v4167_v40  ;;  %v2493_v8 = vpop.eup %2492  ;;  %v1990_v55 = vadd.s32 4294967280, %v3863_v60  ;;  %v1997_v18 = vadd.s32 4294967272, %v3863_v60 }
 0x3dd   :  { %v1469_v52 = vpop.xlane.xlu0 %1468  ;;  %2330 = vmatprep.subr.mxu0 %v4161_v47  ;;  %v2495_v36 = vpop.eup %2494  ;;  %v2004_v2 = vadd.s32 4294967264, %v3863_v60  ;;  %v2011_v23 = vadd.s32 4294967256, %v3863_v60  ;;  %v2018_v20 = vadd.s32 4294967248, %v3863_v60  ;;  %2524 = vrcp.f32 %v3765_v54 }
 0x3de   :  { %2331 = vmatpush3.msra.mxu0 %v1926_v59  ;;  %v2025_v56 = vadd.s32 4294967240, %v3863_v60  ;;  %2526 = vrcp.f32 %v3769_v58  ;;  %v2032_v58 = vadd.s32 4294967232, %v3863_v60 }
 0x3df   :  { %1792 = vadd.xlane.f32.xlu1 %v1745_v39  ;;  %2332 = vmatprep.subr.mxu0 %v4161_v47  ;;  %v1986_v39 = vsub.s32 %v1983_v57, %v4167_v40 }
 0x3e0   :  { %v1501_v26 = vpop.xlane.xlu1 %1500  ;;  %1824 = vadd.xlane.f32.xlu0 %v1761_v48  ;;  %2333 = vmatpush3.msra.mxu0 %v1925_v19 }
 0x3e1   :  { %v3843_v61 = vadd.f32 %v1501_v26, %v1437_v1  ;;  %v1533_v21 = vpop.xlane.xlu0 %1532  ;;  %2334 = vmatprep.subr.mxu0 %v4161_v47  ;;  %v2497_v26 = vpop.eup %2496  ;;  %2528 = vrcp.f32 %v3777_v10 }
 0x3e2   :  { %v3846_v5 = vadd.f32 %v1533_v21, %v1469_v52  ;;  %2335 = vmatpush3.msra.mxu0 %v1924_v28  ;;  %v2499_v34 = vpop.eup %2498  ;;  %2530 = vrcp.f32 %v3781_v27  ;;  %v2039_v27 = vadd.s32 4294967224, %v3863_v60 }
 0x3e3   :  { %2336 = vmatprep.subr.mxu0 %v4161_v47  ;;  %v2501_v3 = vpop.eup %2500  ;;  %2532 = vrcp.f32 %v3789_v37 }
 0x3e4   :  { %v1439_v49 = vpop.xlane.xlu1 %1438  ;;  %2337 = vmatpush3.msra.mxu0 %v1923_v9 }
 0x3e5   :  { %v1471_v33 = vpop.xlane.xlu0 %1470  ;;  %2338 = vmatprep.subr.mxu0 %v4161_v47 }
 0x3e6   :  { %2339 = vmatpush3.msra.mxu0 %v1922_v24 }
 0x3e8   :  { %v1503_v42 = vpop.xlane.xlu1 %1502 }
 0x3e9   :  { %v3852_v22 = vadd.f32 %v1503_v42, %v1439_v49  ;;  %v1535_v31 = vpop.xlane.xlu0 %1534 }
 0x3ea   :  { %v3856_v50 = vadd.f32 %v1535_v31, %v1471_v33 }
 0x3ec   :  { %v1634_v15 = vpop.xlane.xlu1 %1633 }
 0x3ed   :  { %v1636_v25 = vpop.xlane.xlu0 %1635 }
 0x3f0   :  { %v1666_v41 = vpop.xlane.xlu1 %1665 }
 0x3f1   :  { %v1668_v51 = vpop.xlane.xlu0 %1667 }
 0x3f4   :  { %v1763_v30 = vpop.xlane.xlu1 %1762 }
 0x3f5   :  { %v1826_v63 = vadd.f32 %v1763_v30, %v1634_v15  ;;  %v1765_v1 = vpop.xlane.xlu0 %1764 }
 0x3f6   :  { %v1827_v52 = vadd.f32 %v1765_v1, %v1636_v25  ;;  %v1993_v25 = vsub.s32 %v1990_v55, %v4167_v40  ;;  %v2007_v55 = vsub.s32 %v2004_v2, %v4167_v40 }
 0x3f7   :  { %v1890_v13 = vmul.f32 %v2493_v8, %v1826_v63 }
 0x3f8   :  { %v1795_v47 = vpop.xlane.xlu1 %1794  ;;  %v1891_v48 = vmul.f32 %v2495_v36, %v1827_v52 }
 0x3f9   :  { %v1982_v38 = vrot.slane %v1890_v13, %v1981_v45  ;;  %v1842_v29 = vadd.f32 %v1795_v47, %v1666_v41  ;;  %v1797_v32 = vpop.xlane.xlu0 %1796 }
 0x3fa   :  { %v1987_v4 = vrot.slane %v1891_v48, %v1986_v39  ;;  %v1843_v49 = vadd.f32 %v1797_v32, %v1668_v51  ;;  %v2503_v51 = vpop.eup %2502  ;;  %2534 = vrcp.f32 %v3793_v17  ;;  %v2046_v17 = vadd.s32 4294967216, %v3863_v60 }
 0x3fb   :  { %v1906_v21 = vmul.f32 %v2497_v26, %v1842_v29  ;;  %v2505_v36 = vpop.eup %2504  ;;  %2536 = vrcp.f32 %v3801_v43 }
 0x3fc   :  { %v1638_v33 = vpop.xlane.xlu1 %1637  ;;  %v1989_v11 = vsel %vm1988_vm4, %v1987_v4, %v1982_v38  ;;  %v1907_v42 = vmul.f32 %v2499_v34, %v1843_v49  ;;  %v2507_v29 = vpop.eup %2506  ;;  %2538 = vrcp.f32 %v3805_v7  ;;  %v2053_v7 = vadd.s32 4294967208, %v3863_v60 }
 0x3fd   :  { %v2091_v46 = vrot.slane %v1906_v21, %v1981_v45  ;;  %v1670_v59 = vpop.xlane.xlu0 %1669 }
 0x3fe   :  { %v2095_v31 = vrot.slane %v1907_v42, %v1986_v39  ;;  %v2000_v39 = vsub.s32 %v1997_v18, %v4167_v40 }
 0x400   :  { %v1767_v15 = vpop.xlane.xlu1 %1766  ;;  %v2096_v19 = vsel %vm1988_vm4, %v2095_v31, %v2091_v46  ;;  %v2509_v46 = vpop.eup %2508  ;;  %2540 = vrcp.f32 %v3813_v53 }
 0x401   :  { %v1828_v28 = vadd.f32 %v1767_v15, %v1638_v33  ;;  %v1799_v9 = vpop.xlane.xlu0 %1798  ;;  %v2511_v15 = vpop.eup %2510  ;;  %2542 = vrcp.f32 %v3817_v12  ;;  %v2060_v12 = vadd.s32 4294967200, %v3863_v60 }
 0x402   :  { %v1844_v24 = vadd.f32 %v1799_v9, %v1670_v59 }
 0x403   :  { %v1892_v41 = vmul.f32 %v2501_v3, %v1828_v28 }
 0x404   :  { %v1640_v62 = vpop.xlane.xlu1 %1639  ;;  %v1908_v30 = vmul.f32 %v2503_v51, %v1844_v24  ;;  %v2014_v51 = vsub.s32 %v2011_v23, %v4167_v40 }
 0x405   :  { %v1994_v57 = vrot.slane %v1892_v41, %v1993_v25  ;;  %v1672_v45 = vpop.xlane.xlu0 %1671 }
 0x406   :  { %v2100_v8 = vrot.slane %v1908_v30, %v1993_v25 }
 0x407   :  { %v1996_v63 = vsel %vm1995_vm5, %v1994_v57, %v1989_v11  ;;  %v2513_v57 = vpop.eup %2512  ;;  %2544 = vrcp.f32 %v3827_v16 }
 0x408   :  { %v1769_v1 = vpop.xlane.xlu1 %1768  ;;  %v2101_v13 = vsel %vm1995_vm5, %v2100_v8, %v2096_v19 }
 0x409   :  { %v1829_v52 = vadd.f32 %v1769_v1, %v1640_v62  ;;  %v1801_v47 = vpop.xlane.xlu0 %1800 }
 0x40a   :  { %v1845_v48 = vadd.f32 %v1801_v47, %v1672_v45 }
 0x40b   :  { %v1893_v38 = vmul.f32 %v2505_v36, %v1829_v52 }
 0x40c   :  { %v1642_v44 = vpop.xlane.xlu1 %1641  ;;  %v1909_v32 = vmul.f32 %v2507_v29, %v1845_v48 }
 0x40d   :  { %v2001_v26 = vrot.slane %v1893_v38, %v2000_v39  ;;  %v1674_v4 = vpop.xlane.xlu0 %1673  ;;  %v2021_v38 = vsub.s32 %v2018_v20, %v4167_v40 }
 0x40e   :  { %v2105_v49 = vrot.slane %v1909_v32, %v2000_v39 }
 0x40f   :  { %v2003_v21 = vsel %vm2002_vm6, %v2001_v26, %v1996_v63  ;;  %v2515_v63 = vpop.eup %2514  ;;  %2546 = vrcp.f32 %v3832_v0  ;;  %v2067_v0 = vadd.s32 4294967192, %v3863_v60 }
 0x410   :  { %v1771_v34 = vpop.xlane.xlu1 %1770  ;;  %v2106_v33 = vsel %vm2002_vm6, %v2105_v49, %v2101_v13  ;;  %v2517_v29 = vpop.eup %2516  ;;  %2548 = vrcp.f32 %v3843_v61 }
 0x411   :  { %v1830_v11 = vadd.f32 %v1771_v34, %v1642_v44  ;;  %v1803_v42 = vpop.xlane.xlu0 %1802  ;;  %v2519_v2 = vpop.eup %2518  ;;  %2550 = vrcp.f32 %v3846_v5  ;;  %v2074_v5 = vadd.s32 4294967184, %v3863_v60 }
 0x412   :  { %v1846_v31 = vadd.f32 %v1803_v42, %v1674_v4 }
 0x413   :  { %v1894_v59 = vmul.f32 %v2509_v46, %v1830_v11  ;;  %v2028_v46 = vsub.s32 %v2025_v56, %v4167_v40 }
 0x414   :  { %v1644_v14 = vpop.xlane.xlu1 %1643  ;;  %v1910_v25 = vmul.f32 %v2511_v15, %v1846_v31 }
 0x415   :  { %v2008_v19 = vrot.slane %v1894_v59, %v2007_v55  ;;  %v1676_v28 = vpop.xlane.xlu0 %1675  ;;  %v2521_v59 = vpop.eup %2520  ;;  %2552 = vrcp.f32 %v3852_v22 }
 0x416   :  { %v2110_v9 = vrot.slane %v1910_v25, %v2007_v55 }
 0x417   :  { %v2010_v3 = vsel %vm2009_vm7, %v2008_v19, %v2003_v21  ;;  %v2523_v19 = vpop.eup %2522  ;;  %2554 = vrcp.f32 %v3856_v50 }
 0x418   :  { %v1773_v41 = vpop.xlane.xlu1 %1772  ;;  %v2111_v24 = vsel %vm2009_vm7, %v2110_v9, %v2106_v33 }
 0x419   :  { %v1831_v62 = vadd.f32 %v1773_v41, %v1644_v14  ;;  %v1805_v30 = vpop.xlane.xlu0 %1804 }
 0x41a   :  { %v1847_v45 = vadd.f32 %v1805_v30, %v1676_v28 }
 0x41b   :  { %v1895_v18 = vmul.f32 %v2513_v57, %v1831_v62  ;;  %v2525_v57 = vpop.eup %2524 }
 0x41c   :  { %v1646_v6 = vpop.xlane.xlu1 %1645  ;;  %v1911_v1 = vmul.f32 %v2515_v63, %v1847_v45  ;;  %v2527_v63 = vpop.eup %2526 }
 0x41d   :  { %v2015_v8 = vrot.slane %v1895_v18, %v2014_v51  ;;  %v1678_v13 = vpop.xlane.xlu0 %1677 }
 0x41e   :  { %v2115_v52 = vrot.slane %v1911_v1, %v2014_v51  ;;  %v2035_v51 = vsub.s32 %v2032_v58, %v4167_v40  ;;  %v2056_v58 = vsub.s32 %v2053_v7, %v4167_v40 }
 0x41f   :  { %v2017_v39 = vsel %vm2016_vm8, %v2015_v8, %v2010_v3 }
 0x420   :  { %v1775_v36 = vpop.xlane.xlu1 %1774  ;;  %v2116_v47 = vsel %vm2016_vm8, %v2115_v52, %v2111_v24 }
 0x421   :  { %v1832_v48 = vadd.f32 %v1775_v36, %v1646_v6  ;;  %v1807_v44 = vpop.xlane.xlu0 %1806  ;;  %v2042_v36 = vsub.s32 %v2039_v27, %v4167_v40 }
 0x422   :  { %v1848_v32 = vadd.f32 %v1807_v44, %v1678_v13 }
 0x423   :  { %v1896_v26 = vmul.f32 %v2517_v29, %v1832_v48 }
 0x424   :  { %v1648_v35 = vpop.xlane.xlu1 %1647  ;;  %v1912_v21 = vmul.f32 %v2519_v2, %v1848_v32 }
 0x425   :  { %v2022_v4 = vrot.slane %v1896_v26, %v2021_v38  ;;  %v1680_v49 = vpop.xlane.xlu0 %1679 }
 0x426   :  { %v2120_v33 = vrot.slane %v1912_v21, %v2021_v38  ;;  %v2529_v38 = vpop.eup %2528 }
 0x427   :  { %v2024_v34 = vsel %vm2023_vm9, %v2022_v4, %v2017_v39  ;;  %v2531_v26 = vpop.eup %2530 }
 0x428   :  { %v1777_v55 = vpop.xlane.xlu1 %1776  ;;  %v2121_v11 = vsel %vm2023_vm9, %v2120_v33, %v2116_v47 }
 0x429   :  { %v1833_v42 = vadd.f32 %v1777_v55, %v1648_v35  ;;  %v1809_v31 = vpop.xlane.xlu0 %1808  ;;  %v2533_v55 = vpop.eup %2532 }
 0x42a   :  { %v1849_v14 = vadd.f32 %v1809_v31, %v1680_v49 }
 0x42b   :  { %v1897_v15 = vmul.f32 %v2521_v59, %v1833_v42  ;;  %v2535_v59 = vpop.eup %2534 }
 0x42c   :  { %v1650_v54 = vpop.xlane.xlu1 %1649  ;;  %v1913_v23 = vmul.f32 %v2523_v19, %v1849_v14 }
 0x42d   :  { %v2029_v25 = vrot.slane %v1897_v15, %v2028_v46  ;;  %v1682_v28 = vpop.xlane.xlu0 %1681 }
 0x42e   :  { %v2125_v9 = vrot.slane %v1913_v23, %v2028_v46 }
 0x42f   :  { %v2031_v3 = vsel %vm2030_vm10, %v2029_v25, %v2024_v34  ;;  %v2049_v34 = vsub.s32 %v2046_v17, %v4167_v40 }
 0x430   :  { %v1779_v41 = vpop.xlane.xlu1 %1778  ;;  %v2126_v24 = vsel %vm2030_vm10, %v2125_v9, %v2121_v11 }
 0x431   :  { %v1834_v62 = vadd.f32 %v1779_v41, %v1650_v54  ;;  %v1811_v30 = vpop.xlane.xlu0 %1810 }
 0x432   :  { %v1850_v45 = vadd.f32 %v1811_v30, %v1682_v28 }
 0x433   :  { %v1898_v18 = vmul.f32 %v2525_v57, %v1834_v62 }
 0x434   :  { %v1652_v10 = vpop.xlane.xlu1 %1651  ;;  %v1914_v8 = vmul.f32 %v2527_v63, %v1850_v45 }
 0x435   :  { %v2036_v6 = vrot.slane %v1898_v18, %v2035_v51  ;;  %v1684_v1 = vpop.xlane.xlu0 %1683 }
 0x436   :  { %v2130_v13 = vrot.slane %v1914_v8, %v2035_v51 }
 0x437   :  { %v2038_v20 = vsel %vm2037_vm11, %v2036_v6, %v2031_v3  ;;  %v2537_v3 = vpop.eup %2536  ;;  %v2063_v6 = vsub.s32 %v2060_v12, %v4167_v40 }
 0x438   :  { %v1781_v39 = vpop.xlane.xlu1 %1780  ;;  %v2131_v52 = vsel %vm2037_vm11, %v2130_v13, %v2126_v24  ;;  %v2539_v51 = vpop.eup %2538 }
 0x439   :  { %v1835_v47 = vadd.f32 %v1781_v39, %v1652_v10  ;;  %v1813_v48 = vpop.xlane.xlu0 %1812  ;;  %v2541_v27 = vpop.eup %2540 }
 0x43a   :  { %v1851_v44 = vadd.f32 %v1813_v48, %v1684_v1  ;;  %v2543_v39 = vpop.eup %2542 }
 0x43b   :  { %v1899_v29 = vmul.f32 %v2529_v38, %v1835_v47 }
 0x43c   :  { %v1654_v37 = vpop.xlane.xlu1 %1653  ;;  %v1915_v2 = vmul.f32 %v2531_v26, %v1851_v44  ;;  %v2070_v26 = vsub.s32 %v2067_v0, %v4167_v40 }
 0x43d   :  { %v2043_v32 = vrot.slane %v1899_v29, %v2042_v36  ;;  %v1686_v35 = vpop.xlane.xlu0 %1685 }
 0x43e   :  { %v2135_v21 = vrot.slane %v1915_v2, %v2042_v36 }
 0x43f   :  { %v2045_v4 = vsel %vm2044_vm12, %v2043_v32, %v2038_v20  ;;  %v2545_v32 = vpop.eup %2544 }
 0x440   :  { %v1783_v56 = vpop.xlane.xlu1 %1782  ;;  %v2136_v49 = vsel %vm2044_vm12, %v2135_v21, %v2131_v52 }
 0x441   :  { %v1836_v33 = vadd.f32 %v1783_v56, %v1654_v37  ;;  %v1815_v11 = vpop.xlane.xlu0 %1814 }
 0x442   :  { %v1852_v42 = vadd.f32 %v1815_v11, %v1686_v35  ;;  %v2077_v11 = vsub.s32 %v2074_v5, %v4167_v40 }
 0x443   :  { %v1900_v46 = vmul.f32 %v2533_v55, %v1836_v33 }
 0x444   :  { %v1656_v43 = vpop.xlane.xlu1 %1655  ;;  %v1916_v15 = vmul.f32 %v2535_v59, %v1852_v42 }
 0x445   :  { %v2050_v31 = vrot.slane %v1900_v46, %v2049_v34  ;;  %v1688_v14 = vpop.xlane.xlu0 %1687 }
 0x446   :  { %v2140_v54 = vrot.slane %v1916_v15, %v2049_v34 }
 0x447   :  { %v2052_v19 = vsel %vm2051_vm13, %v2050_v31, %v2045_v4  ;;  %v2547_v4 = vpop.eup %2546 }
 0x448   :  { %v1785_v25 = vpop.xlane.xlu1 %1784  ;;  %v2141_v23 = vsel %vm2051_vm13, %v2140_v54, %v2136_v49  ;;  %v2549_v59 = vpop.eup %2548  ;;  %v2081_v54 = vadd.s32 4294967176, %v3863_v60 }
 0x449   :  { %v1837_v28 = vadd.f32 %v1785_v25, %v1656_v43  ;;  %v1817_v9 = vpop.xlane.xlu0 %1816  ;;  %v2551_v7 = vpop.eup %2550 }
 0x44a   :  { %v1853_v24 = vadd.f32 %v1817_v9, %v1688_v14 }
 0x44b   :  { %v1901_v41 = vmul.f32 %v2537_v3, %v1837_v28  ;;  %v2084_v28 = vsub.s32 %v2081_v54, %v4167_v40  ;;  %v2556_v40 = vld [vmem:[%s3944_s4] sm:$0x3] }
 0x44c   :  { %v1658_v53 = vpop.xlane.xlu1 %1657  ;;  %v1917_v57 = vmul.f32 %v2539_v51, %v1853_v24 }
 0x44d   :  { %v2057_v62 = vrot.slane %v1901_v41, %v2056_v58  ;;  %v1690_v30 = vpop.xlane.xlu0 %1689  ;;  %v2553_v41 = vpop.eup %2552 }
 0x44e   :  { %v2145_v45 = vrot.slane %v1917_v57, %v2056_v58 }
 0x44f   :  { %v2059_v18 = vsel %vm2058_vm14, %v2057_v62, %v2052_v19  ;;  %v2555_v62 = vpop.eup %2554 }
 0x450   :  { %v1787_v63 = vpop.xlane.xlu1 %1786  ;;  %v2146_v10 = vsel %vm2058_vm14, %v2145_v45, %v2141_v23 }
 0x451   :  { %v1838_v8 = vadd.f32 %v1787_v63, %v1658_v53  ;;  %v1819_v1 = vpop.xlane.xlu0 %1818  ;;  %v4168_v63 = vld [vmem:[#allocation22_spill] sm:$0xff] }
 0x452   :  { %v1854_v13 = vadd.f32 %v1819_v1, %v1690_v30 }
 0x453   :  { %v1902_v20 = vmul.f32 %v2541_v27, %v1838_v8  ;;  %v4169_v27 = vld [vmem:[#allocation21_spill] sm:$0xff] }
 0x454   :  { %v1660_v16 = vpop.xlane.xlu1 %1659  ;;  %v1918_v36 = vmul.f32 %v2543_v39, %v1854_v13 }
 0x455   :  { %v2064_v52 = vrot.slane %v1902_v20, %v2063_v6  ;;  %v1692_v47 = vpop.xlane.xlu0 %1691 }
 0x456   :  { %v2150_v48 = vrot.slane %v1918_v36, %v2063_v6  ;;  %v2274_v6 = vld [vmem:[%s3948_s8] ss:$0 sm:$0xff] }
 0x457   :  { %v2066_v38 = vsel %vm2065_vm15, %v2064_v52, %v2059_v18 }
 0x458   :  { %v1789_v29 = vpop.xlane.xlu1 %1788  ;;  %v2151_v44 = vsel %vm2065_vm15, %v2150_v48, %v2146_v10  ;;  %v112_v10 = vrot.slane %v2556_v40, %v4168_v63 }
 0x459   :  { %v1839_v37 = vadd.f32 %v1789_v29, %v1660_v16  ;;  %v1821_v2 = vpop.xlane.xlu0 %1820 }
 0x45a   :  { %v1855_v35 = vadd.f32 %v1821_v2, %v1692_v47  ;;  %v188_v1 = vadd.f32 %v4169_v27, %v112_v10 }
 0x45b   :  { %v1903_v17 = vmul.f32 %v2545_v32, %v1839_v37 }
 0x45c   :  { %v1662_v61 = vpop.xlane.xlu1 %1661  ;;  %v1919_v56 = vmul.f32 %v2547_v4, %v1855_v35 }
 0x45d   :  { %v2071_v21 = vrot.slane %v1903_v17, %v2070_v26  ;;  %v1694_v49 = vpop.xlane.xlu0 %1693 }
 0x45e   :  { %v2155_v34 = vrot.slane %v1919_v56, %v2070_v26 }
 0x45f   :  { %v2073_v33 = vsel %vm2072_vm0, %v2071_v21, %v2066_v38 }
 0x460   :  { %v1791_v55 = vpop.xlane.xlu1 %1790  ;;  %v2156_v42 = vsel %vm2072_vm0, %v2155_v34, %v2151_v44 }
 0x461   :  { %v1840_v46 = vadd.f32 %v1791_v55, %v1662_v61  ;;  %v1823_v43 = vpop.xlane.xlu0 %1822 }
 0x462   :  { %v1856_v15 = vadd.f32 %v1823_v43, %v1694_v49 }
 0x463   :  { %v1904_v31 = vmul.f32 %v2549_v59, %v1840_v46 }
 0x464   :  { %v1664_v22 = vpop.xlane.xlu1 %1663  ;;  %v1920_v19 = vmul.f32 %v2551_v7, %v1856_v15 }
 0x465   :  { %v2078_v14 = vrot.slane %v1904_v31, %v2077_v11  ;;  %v1696_v25 = vpop.xlane.xlu0 %1695 }
 0x466   :  { %v2160_v50 = vrot.slane %v1920_v19, %v2077_v11 }
 0x467   :  { %v2080_v23 = vsel %vm2079_vm1, %v2078_v14, %v2073_v33 }
 0x468   :  { %v1793_v58 = vpop.xlane.xlu1 %1792  ;;  %v2161_v9 = vsel %vm2079_vm1, %v2160_v50, %v2156_v42 }
 0x469   :  { %v1841_v3 = vadd.f32 %v1793_v58, %v1664_v22  ;;  %v1825_v24 = vpop.xlane.xlu0 %1824 }
 0x46a   :  { %v1857_v53 = vadd.f32 %v1825_v24, %v1696_v25 }
 0x46b   :  { %v1905_v51 = vmul.f32 %v2553_v41, %v1841_v3 }
 0x46c   :  { %v1921_v12 = vmul.f32 %v2555_v62, %v1857_v53 }
 0x46d   :  { %v2085_v57 = vrot.slane %v1905_v51, %v2084_v28 }
 0x46e   :  { %v2165_v30 = vrot.slane %v1921_v12, %v2084_v28 }
 0x46f   :  { %v2087_v18 = vsel %vm2086_vm2, %v2085_v57, %v2080_v23 }
 0x470   :  { %v2166_v60 = vsel %vm2086_vm2, %v2165_v30, %v2161_v9 }
 0x471   :  { %v2168_v45 = vsel %vm2167_vm3, %v2166_v60, %v2087_v18 }
 0x472   :  { %2341 = vmatmul.mubr.f32.vlgmr.msra.gmra.mxu0 %v2168_v45 }
 0x532   :  { %v2236_v8 = vpop.f32.mrf.mxu0 }
 0x533   :  { %v2237_v20 = vadd.f32 %v2274_v6, %v2236_v8 }
 0x534   :  { %v2342_v13 = vpop.f32.mrf.mxu0 }
 0x535   :  { %v2240_v39 = vadd.f32 %v2237_v20, %v188_v1 }
 0x537   :  { %2241 = vst [vmem:[#allocation12] sm:$0x3] %v2240_v39 }
 0x538   :  { %2656 = shalt.err (!%p2653_p10)
}
 0x539   :  { %2251 = dma.vmem_to_hbm [thread:$0]  %s2249_s29, 32, %s3949_s9, [#allocation4]  }
 0x53a   :  { %2673 = dma.done.wait [#allocation4], 32  }
 0x53b   :  { %2674 = vsyncadd [#allocation4], 4294967264 }
 0x53c   :  { %2255 = vsyncpa [#allocation3], 1 }
 0x53d   :  { %2256 = vsyncpa [#allocation8], 1 }
 0x53e   :  { %2257 = vsyncpa [#allocation11], 1 }
 0x53f   :  { %2258 = vsyncpa [#allocation4], 1 }
 0x540   :  { %2259 = vsyncpa [#allocation5], 1 }

</bundles_post_ra>
